<compile_context>
chip_gen: v7x
topology: tpu7x:2x2x1
jax: 0.10.0
libtpu: 0.0.40
codegen_flags: <defaults>
</compile_context>

<pallas_src>
import jax
import jax.numpy as jnp
from jax import lax
from jax.experimental import pallas as pl
from jax.experimental.pallas import tpu as pltpu
import numpy as np


# --------------------------------------------------------------------------
# Phase A: spectral diffusion + rotation pre-apply (grid = (B,))
# --------------------------------------------------------------------------
def _spectral_diffusion_kernel(
    xm_ref,      # (1, V, C)   f32       x_in * mass
    evecs_ref,   # (1, V, K)   op_dtype
    coefs_ref,   # (1, K, C)   f32       exp(-evals * time)
    are_ref,     # (C, C)      f32
    aim_ref,     # (C, C)      f32
    xd_ref,      # (1, V, C)   f32       out: x_diffuse
    rhs_ref,     # (1, V, 3C)  op_dtype  out: [xd | xd@A_re | xd@A_im]
):
    f32 = jnp.float32
    op_dtype = evecs_ref.dtype

    U = evecs_ref[0]                                  # (V, K)
    xm = xm_ref[0].astype(op_dtype)                   # (V, C)

    # to_basis: evecs^T @ (x * mass), expressed as a dot_general contraction
    # over V -- no explicit (K, V) transposed copy of evecs.
    x_spec = lax.dot_general(
        U, xm, dimension_numbers=(((0,), (0,)), ((), ())),
        preferred_element_type=f32)                   # (K, C)

    spec = (coefs_ref[0] * x_spec).astype(op_dtype)   # (K, C)

    # from_basis
    xd = jnp.dot(U, spec, preferred_element_type=f32)  # (V, C) f32
    xd_ref[0] = xd

    # Pre-apply the gradient-rotation weights once per batch element:
    #   (gradX @ xd) @ A_re == gradX @ (xd @ A_re), etc.
    # so the per-tile gradient work collapses to one matmul per operator.
    xda_re = jnp.dot(xd, are_ref[...], preferred_element_type=f32)
    xda_im = jnp.dot(xd, aim_ref[...], preferred_element_type=f32)
    rhs_ref[0] = jnp.concatenate(
        [xd, xda_re, xda_im], axis=-1).astype(rhs_ref.dtype)


# --------------------------------------------------------------------------
# Phase B: gradient features + MLP + residual (grid = (B, V // tile_v))
# --------------------------------------------------------------------------
def _grad_mlp_kernel(
    x_ref,      # (1, tv, C)   f32       x_in row-tile
    xd_ref,     # (1, tv, C)   f32       x_diffuse row-tile
    rhs_ref,    # (1, V, 3C)   op_dtype  [xd | xd@A_re | xd@A_im], full V
    gx_ref,     # (1, tv, V)   op_dtype  gradX row-tile
    gy_ref,     # (1, tv, V)   op_dtype  gradY row-tile
    w0_ref,     # (3C, H)      f32
    b0_ref,     # (1, H)       f32
    w1_ref,     # (H, C)       f32
    b1_ref,     # (1, C)       f32
    out_ref,    # (1, tv, C)
):
    f32 = jnp.float32
    C = out_ref.shape[2]

    rhs = rhs_ref[0]                                             # (V, 3C)
    gox = jnp.dot(gx_ref[0], rhs, preferred_element_type=f32)    # (tv, 3C)
    goy = jnp.dot(gy_ref[0], rhs, preferred_element_type=f32)    # (tv, 3C)

    gx, gxr, gxi = gox[:, 0:C], gox[:, C:2 * C], gox[:, 2 * C:3 * C]
    gy, gyr, gyi = goy[:, 0:C], goy[:, C:2 * C], goy[:, 2 * C:3 * C]

    # SpatialGradientFeatures (with_gradient_rotations=True)
    b_real = gxr - gyi                # gx @ A_re - gy @ A_im
    b_imag = gyr + gxi                # gy @ A_re + gx @ A_im
    grad_feat = jnp.tanh(gx * b_real + gy * b_imag)              # (tv, C)

    # MiniMLP([3C, H, C]) + residual, with W0 statically split so the 3C
    # lane-axis concat of [x, x_diffuse, grad_feat] is never built.
    # TODO(synk): nn.Dropout(p=0.5) between MLP layers is eval-mode identity here.
    x_t = x_ref[0]
    xd_t = xd_ref[0]
    w0 = w0_ref[...]
    h = (jnp.dot(x_t, w0[0:C], preferred_element_type=f32)
         + jnp.dot(xd_t, w0[C:2 * C], preferred_element_type=f32)
         + jnp.dot(grad_feat, w0[2 * C:3 * C], preferred_element_type=f32)
         + b0_ref[...])
    h = jnp.maximum(h, 0.0)                                      # ReLU
    y = jnp.dot(h, w1_ref[...], preferred_element_type=f32) + b1_ref[...]
    out_ref[0] = (y + x_t).astype(out_ref.dtype)                 # residual


def _pick_tile_v(V, itemsize, tile_v=None, budget_bytes=16 * 1024 * 1024):
    """Largest packing-aligned row tile whose 2 (ops) x 2 (buffers) slabs fit the budget."""
    pack = max(8, 32 // max(int(itemsize), 1))   # f32: 8, bf16: 16, int8/fp8: 32
    if tile_v is None:
        tile_v = max(pack, budget_bytes // (4 * V * int(itemsize)))
    t = int(min(tile_v, V))
    t = max(pack, t - t % pack)
    while t > pack and V % t != 0:
        t -= pack
    if V % t != 0:
        t = V
    return t


def diffusionnet_block(x_in, mass, evals, evecs, gradX, gradY, params,
                       *, tile_v=None, tile_budget_bytes=16 * 1024 * 1024,
                       vmem_limit_bytes=48 * 1024 * 1024):
    """DiffusionNetBlock forward ('spectral' diffusion, eval mode).

    evecs / gradX / gradY are streamed in whatever dtype the caller stored them
    in (pre-cast ONCE at model setup for the bf16 fast path -- the wrapper does
    no per-call reformatting of the O(V^2) operators).  MXU accumulation is f32.
    """
    B, V, C = x_in.shape
    K = evals.shape[-1]
    H = params["w0"].shape[1]
    out_dtype = x_in.dtype
    f32 = jnp.float32
    op_dtype = gradX.dtype

    # ---- tiny per-call prep: O(V*C) / O(K*C); the O(V^2) operators are untouched
    x_f = x_in.astype(f32)
    xm = x_f * mass.astype(f32)[..., None]                         # fold mass here
    time = jnp.maximum(params["time"].astype(f32), 1e-8)           # module clamps t >= 1e-8
    coefs = jnp.exp(-evals.astype(f32)[..., None] * time[None, None, :])   # (B, K, C)
    a_re = params["a_re"].astype(f32)
    a_im = params["a_im"].astype(f32)
    w0 = params["w0"].astype(f32)
    b0 = params["b0"].astype(f32).reshape(1, H)
    w1 = params["w1"].astype(f32)
    b1 = params["b1"].astype(f32).reshape(1, C)

    batch_full = lambda b: (b, 0, 0)
    const2a = lambda b: (0, 0)

    # ---- Phase A: spectral diffusion + rotation pre-apply
    xd, rhs = pl.pallas_call(
        _spectral_diffusion_kernel,
        out_shape=(jax.ShapeDtypeStruct((B, V, C), f32),
                   jax.ShapeDtypeStruct((B, V, 3 * C), op_dtype)),
        grid_spec=pltpu.PrefetchScalarGridSpec(
            num_scalar_prefetch=0,
            grid=(B,),
            in_specs=[
                pl.BlockSpec((1, V, C), batch_full),     # x_in * mass
                pl.BlockSpec((1, V, K), batch_full),     # evecs
                pl.BlockSpec((1, K, C), batch_full),     # diffusion coefficients
                pl.BlockSpec((C, C), const2a),           # A_re
                pl.BlockSpec((C, C), const2a),           # A_im
            ],
            out_specs=[
                pl.BlockSpec((1, V, C), batch_full),       # x_diffuse
                pl.BlockSpec((1, V, 3 * C), batch_full),   # [xd | xd@A_re | xd@A_im]
            ]),
        compiler_params=pltpu.CompilerParams(
            dimension_semantics=("parallel",),
            vmem_limit_bytes=vmem_limit_bytes),
    )(xm, evecs, coefs, a_re, a_im)

    # ---- Phase B: gradient features + MLP, both grid axes parallel
    tv = _pick_tile_v(V, jnp.dtype(op_dtype).itemsize, tile_v, tile_budget_bytes)
    num_tiles = V // tv

    row_tile = lambda b, t: (b, t, 0)
    full_b = lambda b, t: (b, 0, 0)
    const2 = lambda b, t: (0, 0)

    return pl.pallas_call(
        _grad_mlp_kernel,
        out_shape=jax.ShapeDtypeStruct((B, V, C), out_dtype),
        grid_spec=pltpu.PrefetchScalarGridSpec(
            num_scalar_prefetch=0,
            grid=(B, num_tiles),
            in_specs=[
                pl.BlockSpec((1, tv, C), row_tile),        # x_in row-tile
                pl.BlockSpec((1, tv, C), row_tile),        # x_diffuse row-tile
                pl.BlockSpec((1, V, 3 * C), full_b),       # rhs (batch resident)
                pl.BlockSpec((1, tv, V), row_tile),        # gradX row-tile (raw HBM layout)
                pl.BlockSpec((1, tv, V), row_tile),        # gradY row-tile (raw HBM layout)
                pl.BlockSpec((3 * C, H), const2),          # W0
                pl.BlockSpec((1, H), const2),              # b0
                pl.BlockSpec((H, C), const2),              # W1
                pl.BlockSpec((1, C), const2),              # b1
            ],
            out_specs=pl.BlockSpec((1, tv, C), row_tile)),
        compiler_params=pltpu.CompilerParams(
            dimension_semantics=("parallel", "parallel"),
            vmem_limit_bytes=vmem_limit_bytes),
    )(x_f, xd, rhs, gradX, gradY, w0, b0, w1, b1)


def reference_forward(x_in, mass, evals, evecs, gradX, gradY, params):
    """Pure-JAX f32 reference matching the PyTorch module (eval-mode dropout)."""
    hp = jax.lax.Precision.HIGHEST
    time = jnp.maximum(params["time"], 1e-8)
    xm = x_in * mass[..., None]
    x_spec = jnp.einsum("bvk,bvc->bkc", evecs, xm, precision=hp)
    coefs = jnp.exp(-evals[..., None] * time[None, None, :])
    x_diff = jnp.einsum("bvk,bkc->bvc", evecs, coefs * x_spec, precision=hp)
    gx = jnp.einsum("bvw,bwc->bvc", gradX, x_diff, precision=hp)
    gy = jnp.einsum("bvw,bwc->bvc", gradY, x_diff, precision=hp)
    mm = lambda a, b: jnp.einsum("bvc,cd->bvd", a, b, precision=hp)
    b_real = mm(gx, params["a_re"]) - mm(gy, params["a_im"])
    b_imag = mm(gy, params["a_re"]) + mm(gx, params["a_im"])
    grad_feat = jnp.tanh(gx * b_real + gy * b_imag)
    feat = jnp.concatenate([x_in, x_diff, grad_feat], axis=-1)
    h = jnp.maximum(
        jnp.einsum("bvf,fh->bvh", feat, params["w0"], precision=hp) + params["b0"], 0.0)
    return jnp.einsum("bvh,hc->bvc", h, params["w1"], precision=hp) + params["b1"] + x_in


if __name__ == "__main__":
    # Small shapes consistent with the module's forward.
    B, V, C, K, H = 2, 512, 32, 64, 128

    key = jax.random.PRNGKey(0)
    keys = jax.random.split(key, 12)

    x_in = jax.random.normal(keys[0], (B, V, C), jnp.float32)
    mass = jax.nn.softplus(jax.random.normal(keys[1], (B, V), jnp.float32)) + 0.1
    evals = jnp.abs(jax.random.normal(keys[2], (B, K), jnp.float32))
    evecs = jax.random.normal(keys[3], (B, V, K), jnp.float32) / jnp.sqrt(V)
    gradX = jax.random.normal(keys[4], (B, V, V), jnp.float32) / jnp.sqrt(V)
    gradY = jax.random.normal(keys[5], (B, V, V), jnp.float32) / jnp.sqrt(V)

    params = {
        # Module init: diffusion_time = 0 (clamped to 1e-8 in forward).
        "time": jnp.zeros((C,), jnp.float32),
        # Linear layers stored as right-multiply matrices: out = in @ W.
        "a_re": 0.1 * jax.random.normal(keys[6], (C, C), jnp.float32),
        "a_im": 0.1 * jax.random.normal(keys[7], (C, C), jnp.float32),
        "w0": 0.1 * jax.random.normal(keys[8], (3 * C, H), jnp.float32),
        "b0": 0.01 * jax.random.normal(keys[9], (H,), jnp.float32),
        "w1": 0.1 * jax.random.normal(keys[10], (H, C), jnp.float32),
        "b1": 0.01 * jax.random.normal(keys[11], (C,), jnp.float32),
    }

    ref = jax.block_until_ready(
        reference_forward(x_in, mass, evals, evecs, gradX, gradY, params))

    # 1) Exact-precision check: operators stored in f32 (tight tolerance).
    out_f32 = jax.block_until_ready(
        diffusionnet_block(x_in, mass, evals, evecs, gradX, gradY, params))
    np.testing.assert_allclose(np.asarray(out_f32), np.asarray(ref),
                               rtol=1e-3, atol=1e-3)

    # 2) Performance configuration: evecs / gradient operators pre-cast to bf16
    #    ONCE here ("model setup"); the forward wrapper does no per-call cast of
    #    the O(V^2) stream.  MXU accumulation stays f32.
    evecs_bf = evecs.astype(jnp.bfloat16)
    gradX_bf = gradX.astype(jnp.bfloat16)
    gradY_bf = gradY.astype(jnp.bfloat16)
    out_bf16 = jax.block_until_ready(
        diffusionnet_block(x_in, mass, evals, evecs_bf, gradX_bf, gradY_bf, params))
    np.testing.assert_allclose(np.asarray(out_bf16), np.asarray(ref),
                               rtol=1e-1, atol=1e-1)

    print("KERNEL_OK")
</pallas_src>

<mosaic_0001>
module attributes {stable_mosaic.version = 11 : i64} {
  func.func @_spectral_diffusion_kernel(%arg0: i32, %arg1: memref<1x512x32xf32, #tpu.memory_space<vmem>>, %arg2: memref<1x512x64xf32, #tpu.memory_space<vmem>>, %arg3: memref<1x64x32xf32, #tpu.memory_space<vmem>>, %arg4: memref<32x32xf32, #tpu.memory_space<vmem>>, %arg5: memref<32x32xf32, #tpu.memory_space<vmem>>, %arg6: memref<1x512x32xf32, #tpu.memory_space<vmem>>, %arg7: memref<1x512x96xf32, #tpu.memory_space<vmem>>) attributes {dimension_semantics = [#tpu.dimension_semantics<parallel>], iteration_bounds = array<i64: 2>, scalar_prefetch = 0 : i64, scratch_operands = 0 : i64, tpu.core_type = #tpu.core_type<tc>, window_params = [{transform_indices = @transform_0, window_bounds = array<i64: 1, 512, 32>}, {transform_indices = @transform_1, window_bounds = array<i64: 1, 512, 64>}, {transform_indices = @transform_2, window_bounds = array<i64: 1, 64, 32>}, {pipeline_mode = #tpu.pipeline_mode<synchronous>, transform_indices = @transform_3, window_bounds = array<i64: 32, 32>}, {pipeline_mode = #tpu.pipeline_mode<synchronous>, transform_indices = @transform_4, window_bounds = array<i64: 32, 32>}, {transform_indices = @transform_5, window_bounds = array<i64: 1, 512, 32>}, {transform_indices = @transform_6, window_bounds = array<i64: 1, 512, 96>}]} {
    %c0 = arith.constant 0 : index
    %c0_0 = arith.constant 0 : index
    %c0_1 = arith.constant 0 : index
    %0 = vector.load %arg2[%c0, %c0_0, %c0_1] : memref<1x512x64xf32, #tpu.memory_space<vmem>>, vector<1x512x64xf32>
    %1 = vector.shape_cast %0 : vector<1x512x64xf32> to vector<512x64xf32>
    %c0_2 = arith.constant 0 : index
    %c0_3 = arith.constant 0 : index
    %c0_4 = arith.constant 0 : index
    %2 = vector.load %arg1[%c0_2, %c0_3, %c0_4] : memref<1x512x32xf32, #tpu.memory_space<vmem>>, vector<1x512x32xf32>
    %3 = vector.shape_cast %2 : vector<1x512x32xf32> to vector<512x32xf32>
    %cst = arith.constant dense<0.000000e+00> : vector<64x32xf32>
    %4 = tpu.matmul %1, %3, %cst {dimension_numbers = #tpu.dot_dimension_numbers<[0], [0], [1], [1], [0, 1, 1, 1], [], []>} : vector<512x64xf32>, vector<512x32xf32>, vector<64x32xf32> -> vector<64x32xf32>
    %c0_5 = arith.constant 0 : index
    %c0_6 = arith.constant 0 : index
    %c0_7 = arith.constant 0 : index
    %5 = vector.load %arg3[%c0_5, %c0_6, %c0_7] : memref<1x64x32xf32, #tpu.memory_space<vmem>>, vector<1x64x32xf32>
    %6 = vector.shape_cast %5 : vector<1x64x32xf32> to vector<64x32xf32>
    %7 = arith.mulf %6, %4 : vector<64x32xf32>
    %cst_8 = arith.constant dense<0.000000e+00> : vector<512x32xf32>
    %8 = tpu.matmul %1, %7, %cst_8 {dimension_numbers = #tpu.dot_dimension_numbers<[1], [0], [0], [1], [0, 0, 1, 1], [], []>} : vector<512x64xf32>, vector<64x32xf32>, vector<512x32xf32> -> vector<512x32xf32>
    %c0_9 = arith.constant 0 : index
    %c0_10 = arith.constant 0 : index
    %c0_11 = arith.constant 0 : index
    %9 = vector.load %arg6[%c0_9, %c0_10, %c0_11] : memref<1x512x32xf32, #tpu.memory_space<vmem>>, vector<1x512x32xf32>
    %10 = vector.shape_cast %9 : vector<1x512x32xf32> to vector<512x32xf32>
    %11 = vector.shape_cast %8 : vector<512x32xf32> to vector<1x512x32xf32>
    tpu.vector_store %arg6[%c0_9, %c0_10, %c0_11], %11 {strides = array<i32>} : memref<1x512x32xf32, #tpu.memory_space<vmem>>, vector<1x512x32xf32>,
    %c0_12 = arith.constant 0 : index
    %c0_13 = arith.constant 0 : index
    %12 = vector.load %arg4[%c0_12, %c0_13] : memref<32x32xf32, #tpu.memory_space<vmem>>, vector<32x32xf32>
    %cst_14 = arith.constant dense<0.000000e+00> : vector<512x32xf32>
    %13 = tpu.matmul %8, %12, %cst_14 {dimension_numbers = #tpu.dot_dimension_numbers<[1], [0], [0], [1], [0, 0, 1, 1], [], []>} : vector<512x32xf32>, vector<32x32xf32>, vector<512x32xf32> -> vector<512x32xf32>
    %c0_15 = arith.constant 0 : index
    %c0_16 = arith.constant 0 : index
    %14 = vector.load %arg5[%c0_15, %c0_16] : memref<32x32xf32, #tpu.memory_space<vmem>>, vector<32x32xf32>
    %cst_17 = arith.constant dense<0.000000e+00> : vector<512x32xf32>
    %15 = tpu.matmul %8, %14, %cst_17 {dimension_numbers = #tpu.dot_dimension_numbers<[1], [0], [0], [1], [0, 0, 1, 1], [], []>} : vector<512x32xf32>, vector<32x32xf32>, vector<512x32xf32> -> vector<512x32xf32>
    %16 = tpu.concatenate %8, %13, %15 in 1 : vector<512x32xf32>, vector<512x32xf32>, vector<512x32xf32> -> vector<512x96xf32>
    %c0_18 = arith.constant 0 : index
    %c0_19 = arith.constant 0 : index
    %c0_20 = arith.constant 0 : index
    %17 = vector.load %arg7[%c0_18, %c0_19, %c0_20] : memref<1x512x96xf32, #tpu.memory_space<vmem>>, vector<1x512x96xf32>
    %18 = vector.shape_cast %17 : vector<1x512x96xf32> to vector<512x96xf32>
    %19 = vector.shape_cast %16 : vector<512x96xf32> to vector<1x512x96xf32>
    tpu.vector_store %arg7[%c0_18, %c0_19, %c0_20], %19 {strides = array<i32>} : memref<1x512x96xf32, #tpu.memory_space<vmem>>, vector<1x512x96xf32>,
    return
  }
  func.func @transform_0(%arg0: i32) -> (i32, i32, i32) {
    %c0_i32 = arith.constant 0 : i32
    %c0_i32_0 = arith.constant 0 : i32
    %c0_i32_1 = arith.constant 0 : i32
    return %arg0, %c0_i32, %c0_i32_0 : i32, i32, i32
  }
  func.func @transform_1(%arg0: i32) -> (i32, i32, i32) {
    %c0_i32 = arith.constant 0 : i32
    %c0_i32_0 = arith.constant 0 : i32
    %c0_i32_1 = arith.constant 0 : i32
    return %arg0, %c0_i32, %c0_i32_0 : i32, i32, i32
  }
  func.func @transform_2(%arg0: i32) -> (i32, i32, i32) {
    %c0_i32 = arith.constant 0 : i32
    %c0_i32_0 = arith.constant 0 : i32
    %c0_i32_1 = arith.constant 0 : i32
    return %arg0, %c0_i32, %c0_i32_0 : i32, i32, i32
  }
  func.func @transform_3(%arg0: i32) -> (i32, i32) {
    %c0_i32 = arith.constant 0 : i32
    %c0_i32_0 = arith.constant 0 : i32
    %c0_i32_1 = arith.constant 0 : i32
    return %c0_i32, %c0_i32_0 : i32, i32
  }
  func.func @transform_4(%arg0: i32) -> (i32, i32) {
    %c0_i32 = arith.constant 0 : i32
    %c0_i32_0 = arith.constant 0 : i32
    %c0_i32_1 = arith.constant 0 : i32
    return %c0_i32, %c0_i32_0 : i32, i32
  }
  func.func @transform_5(%arg0: i32) -> (i32, i32, i32) {
    %c0_i32 = arith.constant 0 : i32
    %c0_i32_0 = arith.constant 0 : i32
    %c0_i32_1 = arith.constant 0 : i32
    return %arg0, %c0_i32, %c0_i32_0 : i32, i32, i32
  }
  func.func @transform_6(%arg0: i32) -> (i32, i32, i32) {
    %c0_i32 = arith.constant 0 : i32
    %c0_i32_0 = arith.constant 0 : i32
    %c0_i32_1 = arith.constant 0 : i32
    return %arg0, %c0_i32, %c0_i32_0 : i32, i32, i32
  }
}

</mosaic_0001>

<bundles_post_ra>
// kernel: tpu_custom_call.1
= control target key start
LH: loop header
LB: loop body
LE: loop exit
PB: predicated region body
PF: predicated region fallthrough
CT: control target
= control target key end

     0   :  { %s4378_s21 = smov 0   ;;  %s6171_s0 = inlined_call_operand.vmem [shape: f32[2,512,32], index: 0, kind: input, shape index: {}]   ;;  %s6172_s1 = inlined_call_operand.vmem [shape: f32[2,512,64], index: 1, kind: input, shape index: {}]   ;;  %s6173_s2 = inlined_call_operand.vmem [shape: f32[2,64,32], index: 2, kind: input, shape index: {}]   ;;  %s6174_s3 = inlined_call_operand.vmem [shape: f32[32,32], index: 3, kind: input, shape index: {}]   ;;  %s6175_s4 = inlined_call_operand.vmem [shape: f32[32,32], index: 4, kind: input, shape index: {}]   ;;  %s6176_s5 = inlined_call_operand.vmem [shape: f32[2,512,32], index: 5, kind: output, shape index: {0}]   ;;  %s6177_s6 = inlined_call_operand.vmem [shape: f32[2,512,96], index: 6, kind: output, shape index: {1}]  }
   0x1 LB: > { %s3217_s22 = sadd.s32 4294967295, %s4339_s21   ;;  %p3221_p0 = scmp.ge.s32.totalorder %s4339_s21, 1  ;;  %s4339_s21 = sphi %s4378_s21, %s17_s21  }
   0x2   : > { %p235_p1 = scmp.lt.s32.totalorder %s4339_s21, 3 }
   0x4   : > { %p236_p2 = pnand %p3221_p0, %p235_p1 }
   0x6   : > { %239 = sbr.rel (%p236_p2) target bundleno = 1207 (0x4b7), region = 40 }
   0xd   : > { %p280_p3 = scmp.lt.s32.totalorder %s3217_s22, 1  ;;  %vm787_vm0 = vcmask 523264   ;;  %vm1365_vm1 = vcmask 261120   ;;  %s4341_s7 = smov 32   ;;  %vm3040_vm2 = vcmask 785408  }
   0xe   : > { %s4342_s8 = smov 64  }
   0xf   : > { %s6421_s22 = smov (!%p280_p3, %s3217_s22), 1 }
  0x10   : > { %s4389_s23 = sshll.u32 %s6421_s22, 9  ;;  %s3428_s30 = sshll.u32 %s6421_s22, 6 }
  0x11   : > { %s4395_s26 = scalar_lea.vmem %s6172_s1, %s4389_s23  ;;  %s4481_s29 = scalar_lea.vmem %s6171_s0, %s4389_s23 }
  0x12   : > { %v321_v0 = vld [vmem:[%s4395_s26 + $0x80] sm:$0xff]  ;;  %v322_v5 = vld [vmem:[%s4395_s26 + $0x88] sm:$0xff]  ;;  %v4418_v12 = vld [vmem:[%s4395_s26 + $0x90] sm:$0xff]  ;;  %s4719_s9 = scalar_lea.vmem %s6173_s2, %s3428_s30  ;;  %s4881_s30 = scalar_lea.vmem %s6176_s5, %s4389_s23 }
  0x13   : > { %v353_v1 = vld [vmem:[%s4395_s26 + $0x180] sm:$0xff]  ;;  %v354_v6 = vld [vmem:[%s4395_s26 + $0x188] sm:$0xff]  ;;  %v4421_v13 = vld [vmem:[%s4395_s26 + $0x190] sm:$0xff]  ;;  %s5682_s11 = scalar_lea.vmem %s6177_s6, %s4389_s23 }
  0x14   : > { %v4400_v2 = vld [vmem:[%s4395_s26] sm:$0xff]  ;;  %v4185_v3 = vpack.i.bf16 %v353_v1, %v321_v0  ;;  %v4410_v8 = vld [vmem:[%s4395_s26 + $0x8] sm:$0xff]  ;;  %v4187_v10 = vpack.i.bf16 %v354_v6, %v322_v5  ;;  %v4424_v14 = vld [vmem:[%s4395_s26 + $0x10] sm:$0xff]  ;;  %v4189_v16 = vpack.i.bf16 %v4421_v13, %v4418_v12 }
  0x15   : > { %v4403_v4 = vld [vmem:[%s4395_s26 + $0x100] sm:$0xff]  ;;  %v4413_v9 = vld [vmem:[%s4395_s26 + $0x108] sm:$0xff]  ;;  %v4427_v15 = vld [vmem:[%s4395_s26 + $0x110] sm:$0xff] }
  0x16   : > { %v4257_v7 = vpack.i.bf16 %v4403_v4, %v4400_v2  ;;  %4186 = vxpose.xlu0.b32.start [1/16] (narrow) %v4185_v3, 64  ;;  %v4259_v11 = vpack.i.bf16 %v4413_v9, %v4410_v8  ;;  %v4261_v17 = vpack.i.bf16 %v4427_v15, %v4424_v14  ;;  %v4434_v18 = vld [vmem:[%s4395_s26 + $0x98] sm:$0xff]  ;;  %v4450_v24 = vld [vmem:[%s4395_s26 + $0xa0] sm:$0xff]  ;;  %v4466_v30 = vld [vmem:[%s4395_s26 + $0xa8] sm:$0xff] }
  0x17   : > { %v4437_v19 = vld [vmem:[%s4395_s26 + $0x198] sm:$0xff]  ;;  %v4453_v25 = vld [vmem:[%s4395_s26 + $0x1a0] sm:$0xff]  ;;  %v4469_v31 = vld [vmem:[%s4395_s26 + $0x1a8] sm:$0xff] }
  0x18   : > { %4258 = vxpose.xlu1.b32.start [1/16] (narrow) %v4257_v7, 64  ;;  %v4440_v20 = vld [vmem:[%s4395_s26 + $0x18] sm:$0xff]  ;;  %v4191_v22 = vpack.i.bf16 %v4437_v19, %v4434_v18  ;;  %v4456_v26 = vld [vmem:[%s4395_s26 + $0x20] sm:$0xff]  ;;  %v4193_v28 = vpack.i.bf16 %v4453_v25, %v4450_v24  ;;  %v4472_v32 = vld [vmem:[%s4395_s26 + $0x28] sm:$0xff]  ;;  %v4195_v34 = vpack.i.bf16 %v4469_v31, %v4466_v30 }
  0x19   : > { %v4443_v21 = vld [vmem:[%s4395_s26 + $0x118] sm:$0xff]  ;;  %v4459_v27 = vld [vmem:[%s4395_s26 + $0x120] sm:$0xff]  ;;  %v4475_v33 = vld [vmem:[%s4395_s26 + $0x128] sm:$0xff] }
  0x1a   : > { %4188 = vxpose.xlu0.b32.cont [2/16] (narrow) %v4187_v10, 64  ;;  %v4263_v23 = vpack.i.bf16 %v4443_v21, %v4440_v20  ;;  %v4265_v29 = vpack.i.bf16 %v4459_v27, %v4456_v26  ;;  %v4267_v35 = vpack.i.bf16 %v4475_v33, %v4472_v32  ;;  %v4488_v36 = vld [vmem:[%s4395_s26 + $0xb0] sm:$0xff]  ;;  %v385_v40 = vld [vmem:[%s4481_s29 + $0x80] sm:$0xff]  ;;  %v386_v41 = vld [vmem:[%s4481_s29 + $0x88] sm:$0xff] }
  0x1b   : > { %v4491_v37 = vld [vmem:[%s4395_s26 + $0x1b0] sm:$0xff]  ;;  %v4502_v42 = vld [vmem:[%s4395_s26 + $0xb8] sm:$0xff]  ;;  %v4071_v44 = vpack.c.bf16 %v386_v41, %v385_v40  ;;  %v417_v45 = vld [vmem:[%s4481_s29 + $0x180] sm:$0xff] }
  0x1c   : > { %4260 = vxpose.xlu1.b32.cont [2/16] (narrow) %v4259_v11, 64  ;;  %v4494_v38 = vld [vmem:[%s4395_s26 + $0x30] sm:$0xff]  ;;  %6246 = vst [vmem:[#allocation2_spill] sm:$0xff] %v4502_v42  ;;  %v4505_v43 = vld [vmem:[%s4395_s26 + $0x1b8] sm:$0xff]  ;;  %v418_v46 = vld [vmem:[%s4481_s29 + $0x188] sm:$0xff]  ;;  %v4197_v48 = vpack.i.bf16 %v4491_v37, %v4488_v36 }
  0x1d   : > { %v4497_v39 = vld [vmem:[%s4395_s26 + $0x130] sm:$0xff]  ;;  %6247 = vst [vmem:[#allocation3_spill] sm:$0xff] %v4505_v43  ;;  %v369_v47 = vld [vmem:[%s4481_s29] sm:$0xff]  ;;  %v4513_v49 = vld [vmem:[%s4395_s26 + $0x38] sm:$0xff]  ;;  %v4103_v51 = vpack.c.bf16 %v418_v46, %v417_v45  ;;  %4072 = vmatprep.subr.bf16.mxu0 %v4071_v44 }
  0x1e   : > { %4190 = vxpose.xlu0.b32.cont [3/16] (narrow) %v4189_v16, 64  ;;  %v4516_v50 = vld [vmem:[%s4395_s26 + $0x138] sm:$0xff]  ;;  %v370_v52 = vld [vmem:[%s4481_s29 + $0x8] sm:$0xff]  ;;  %v401_v53 = vld [vmem:[%s4481_s29 + $0x100] sm:$0xff]  ;;  %v4269_v55 = vpack.i.bf16 %v4497_v39, %v4494_v38  ;;  %v4199_v16 = vpack.i.bf16 %v4505_v43, %v4502_v42 }
  0x1f   : > { %v402_v54 = vld [vmem:[%s4481_s29 + $0x108] sm:$0xff]  ;;  %v4073_v56 = vpack.c.bf16 %v370_v52, %v369_v47  ;;  %v387_v58 = vld [vmem:[%s4481_s29 + $0x90] sm:$0xff]  ;;  %v388_v59 = vld [vmem:[%s4481_s29 + $0x98] sm:$0xff]  ;;  %4104 = vmatprep.subr.bf16.mxu1 %v4103_v51 }
  0x20   : > { %4262 = vxpose.xlu1.b32.cont [3/16] (narrow) %v4261_v17, 64  ;;  %v4105_v57 = vpack.c.bf16 %v402_v54, %v401_v53  ;;  %v419_v60 = vld [vmem:[%s4481_s29 + $0x190] sm:$0xff]  ;;  %v4075_v61 = vpack.c.bf16 %v388_v59, %v387_v58  ;;  %v420_v62 = vld [vmem:[%s4481_s29 + $0x198] sm:$0xff]  ;;  %v4530_v1 = vld [vmem:[%s4395_s26 + $0xc0] sm:$0xff] }
  0x21   : > { %v371_v63 = vld [vmem:[%s4481_s29 + $0x10] sm:$0xff]  ;;  %v372_v0 = vld [vmem:[%s4481_s29 + $0x18] sm:$0xff]  ;;  %6248 = vst [vmem:[#allocation4_spill] sm:$0xff] %v4530_v1  ;;  %v4533_v3 = vld [vmem:[%s4395_s26 + $0x1c0] sm:$0xff]  ;;  %4074 = vmatpush3.bf16.msra.mxu0 %v4073_v56  ;;  %v4107_v5 = vpack.c.bf16 %v420_v62, %v419_v60 }
  0x22   : > { %4192 = vxpose.xlu0.b32.cont [4/16] (narrow) %v4191_v22, 64  ;;  %6249 = vst [vmem:[#allocation5_spill] sm:$0xff] %v4533_v3  ;;  %4106 = vmatpush3.bf16.msra.mxu1 %v4105_v57  ;;  %v4077_v6 = vpack.c.bf16 %v372_v0, %v371_v63  ;;  %v403_v7 = vld [vmem:[%s4481_s29 + $0x110] sm:$0xff]  ;;  %v404_v10 = vld [vmem:[%s4481_s29 + $0x118] sm:$0xff]  ;;  %v389_v11 = vld [vmem:[%s4481_s29 + $0xa0] sm:$0xff]  ;;  %v4201_v59 = vpack.i.bf16 %v4533_v3, %v4530_v1 }
  0x23   : > { %v4541_v17 = vld [vmem:[%s4395_s26 + $0x40] sm:$0xff]  ;;  %4076 = vmatprep.subr.bf16.mxu0 %v4075_v61  ;;  %4108 = vmatprep.subr.bf16.mxu1 %v4107_v5  ;;  %v374_v45 = vld [vmem:[%s4481_s29 + $0x28] sm:$0xff]  ;;  %v392_v51 = vld [vmem:[%s4481_s29 + $0xb8] sm:$0xff] }
  0x24   : > { %4264 = vxpose.xlu1.b32.cont [4/16] (narrow) %v4263_v23, 64  ;;  %v4544_v22 = vld [vmem:[%s4395_s26 + $0x140] sm:$0xff]  ;;  %v4109_v23 = vpack.c.bf16 %v404_v10, %v403_v7  ;;  %v406_v47 = vld [vmem:[%s4481_s29 + $0x128] sm:$0xff]  ;;  %v423_v56 = vld [vmem:[%s4481_s29 + $0x1b0] sm:$0xff] }
  0x25   : > { %v373_v44 = vld [vmem:[%s4481_s29 + $0x20] sm:$0xff]  ;;  %v4558_v52 = vld [vmem:[%s4395_s26 + $0xc8] sm:$0xff]  ;;  %4078 = vmatpush3.bf16.msra.mxu0 %v4077_v6  ;;  %v424_v57 = vld [vmem:[%s4481_s29 + $0x1b8] sm:$0xff]  ;;  %v4273_v0 = vpack.i.bf16 %v4544_v22, %v4541_v17 }
  0x26   : > { %4194 = vxpose.xlu0.b32.cont [5/16] (narrow) %v4193_v28, 64  ;;  %v390_v28 = vld [vmem:[%s4481_s29 + $0xa8] sm:$0xff]  ;;  %v405_v46 = vld [vmem:[%s4481_s29 + $0x120] sm:$0xff]  ;;  %6250 = vst [vmem:[#allocation6_spill] sm:$0xff] %v4558_v52  ;;  %4110 = vmatpush3.bf16.msra.mxu1 %v4109_v23  ;;  %v4081_v54 = vpack.c.bf16 %v374_v45, %v373_v44  ;;  %v375_v58 = vld [vmem:[%s4481_s29 + $0x30] sm:$0xff]  ;;  %v4115_v6 = vpack.c.bf16 %v424_v57, %v423_v56 }
  0x27   : > { %v4079_v40 = vpack.c.bf16 %v390_v28, %v389_v11  ;;  %v4561_v53 = vld [vmem:[%s4395_s26 + $0x1c8] sm:$0xff]  ;;  %v376_v61 = vld [vmem:[%s4481_s29 + $0x38] sm:$0xff]  ;;  %v407_v62 = vld [vmem:[%s4481_s29 + $0x130] sm:$0xff] }
  0x28   : > { %4266 = vxpose.xlu1.b32.cont [5/16] (narrow) %v4265_v29, 64  ;;  %v421_v29 = vld [vmem:[%s4481_s29 + $0x1a0] sm:$0xff]  ;;  %6251 = vst [vmem:[#allocation7_spill] sm:$0xff] %v4561_v53  ;;  %v408_v63 = vld [vmem:[%s4481_s29 + $0x138] sm:$0xff]  ;;  %v4574_v5 = vld [vmem:[%s4395_s26 + $0x48] sm:$0xff] }
  0x29   : > { %4080 = vmatprep.subr.bf16.mxu0 %v4079_v40  ;;  %v393_v7 = vld [vmem:[%s4481_s29 + $0xc0] sm:$0xff]  ;;  %v394_v10 = vld [vmem:[%s4481_s29 + $0xc8] sm:$0xff]  ;;  %v4584_v28 = vld [vmem:[%s4395_s26 + $0xd0] sm:$0xff] }
  0x2a   : > { %4196 = vxpose.xlu0.b32.cont [6/16] (narrow) %v4195_v34, 64  ;;  %v422_v34 = vld [vmem:[%s4481_s29 + $0x1a8] sm:$0xff]  ;;  %6252 = vst [vmem:[#allocation8_spill] sm:$0xff] %v4584_v28  ;;  %4082 = vmatpush3.bf16.msra.mxu0 %v4081_v54  ;;  %v377_v40 = vld [vmem:[%s4481_s29 + $0x40] sm:$0xff]  ;;  %v4087_v44 = vpack.c.bf16 %v394_v10, %v393_v7  ;;  %v396_v56 = vld [vmem:[%s4481_s29 + $0xd8] sm:$0xff] }
  0x2b   : > { %v4111_v41 = vpack.c.bf16 %v422_v34, %v421_v29  ;;  %v4579_v11 = vld [vmem:[%s4395_s26 + $0x148] sm:$0xff]  ;;  %v4587_v29 = vld [vmem:[%s4395_s26 + $0x1d0] sm:$0xff]  ;;  %v4085_v34 = vpack.c.bf16 %v376_v61, %v375_v58  ;;  %v4611_v61 = vld [vmem:[%s4395_s26 + $0x1d8] sm:$0xff] }
  0x2c   : > { %4268 = vxpose.xlu1.b32.cont [6/16] (narrow) %v4267_v35, 64  ;;  %v4271_v35 = vpack.i.bf16 %v4516_v50, %v4513_v49  ;;  %v426_v23 = vld [vmem:[%s4481_s29 + $0x1c8] sm:$0xff]  ;;  %6253 = vst [vmem:[#allocation9_spill] sm:$0xff] %v4587_v29  ;;  %v4603_v57 = vld [vmem:[%s4395_s26 + $0x150] sm:$0xff]  ;;  %6255 = vst [vmem:[#allocation11_spill] sm:$0xff] %v4611_v61 }
  0x2d   : > { %4112 = vmatprep.subr.bf16.mxu1 %v4111_v41  ;;  %v4203_v41 = vpack.i.bf16 %v4561_v53, %v4558_v52  ;;  %v378_v45 = vld [vmem:[%s4481_s29 + $0x48] sm:$0xff]  ;;  %v427_v58 = vld [vmem:[%s4481_s29 + $0x1d0] sm:$0xff]  ;;  %v380_v10 = vld [vmem:[%s4481_s29 + $0x58] sm:$0xff] }
  0x2e   : > { %4198 = vxpose.xlu0.b32.cont [7/16] (narrow) %v4197_v48, 64  ;;  %v391_v48 = vld [vmem:[%s4481_s29 + $0xb0] sm:$0xff]  ;;  %v413_v53 = vld [vmem:[%s4481_s29 + $0x160] sm:$0xff]  ;;  %v414_v52 = vld [vmem:[%s4481_s29 + $0x168] sm:$0xff] }
  0x2f   : > { %v4083_v60 = vpack.c.bf16 %v392_v51, %v391_v48  ;;  %v4275_v48 = vpack.i.bf16 %v4579_v11, %v4574_v5  ;;  %v4598_v51 = vld [vmem:[%s4395_s26 + $0x50] sm:$0xff] }
  0x30   : > { %4270 = vxpose.xlu1.b32.cont [7/16] (narrow) %v4269_v55, 64  ;;  %v4113_v55 = vpack.c.bf16 %v406_v47, %v405_v46  ;;  %v409_v46 = vld [vmem:[%s4481_s29 + $0x140] sm:$0xff]  ;;  %v410_v47 = vld [vmem:[%s4481_s29 + $0x148] sm:$0xff] }
  0x31   : > { %4084 = vmatprep.subr.bf16.mxu0 %v4083_v60  ;;  %v4608_v60 = vld [vmem:[%s4395_s26 + $0xd8] sm:$0xff] }
  0x32   : > { %4200 = vxpose.xlu0.b32.cont [8/16] (narrow) %v4199_v16, 64  ;;  %v425_v16 = vld [vmem:[%s4481_s29 + $0x1c0] sm:$0xff]  ;;  %4114 = vmatpush3.bf16.msra.mxu1 %v4113_v55  ;;  %v395_v55 = vld [vmem:[%s4481_s29 + $0xd0] sm:$0xff]  ;;  %6254 = vst [vmem:[#allocation10_spill] sm:$0xff] %v4608_v60 }
  0x33   : > { %4116 = vmatprep.subr.bf16.mxu1 %v4115_v6  ;;  %v4119_v54 = vpack.c.bf16 %v426_v23, %v425_v16  ;;  %4086 = vmatpush3.bf16.msra.mxu0 %v4085_v34  ;;  %v4205_v6 = vpack.i.bf16 %v4587_v29, %v4584_v28  ;;  %v4091_v7 = vpack.c.bf16 %v396_v56, %v395_v55  ;;  %v411_v16 = vld [vmem:[%s4481_s29 + $0x150] sm:$0xff]  ;;  %v412_v23 = vld [vmem:[%s4481_s29 + $0x158] sm:$0xff]  ;;  %v4632_v55 = vld [vmem:[%s4395_s26 + $0xe0] sm:$0xff] }
  0x34   : > { %4272 = vxpose.xlu1.b32.cont [8/16] (narrow) %v4271_v35, 64  ;;  %v4117_v35 = vpack.c.bf16 %v408_v63, %v407_v62  ;;  %v4089_v62 = vpack.c.bf16 %v378_v45, %v377_v40  ;;  %v4121_v63 = vpack.c.bf16 %v410_v47, %v409_v46  ;;  %4088 = vmatprep.subr.bf16.mxu0 %v4087_v44  ;;  %v398_v45 = vld [vmem:[%s4481_s29 + $0xe8] sm:$0xff]  ;;  %v4627_v46 = vld [vmem:[%s4395_s26 + $0x158] sm:$0xff]  ;;  %v429_v44 = vld [vmem:[%s4481_s29 + $0x1e0] sm:$0xff] }
  0x35   : > { %v4277_v34 = vpack.i.bf16 %v4603_v57, %v4598_v51  ;;  %v430_v47 = vld [vmem:[%s4481_s29 + $0x1e8] sm:$0xff]  ;;  %6256 = vst [vmem:[#allocation12_spill] sm:$0xff] %v4632_v55 }
  0x36   : > { %4202 = vxpose.xlu0.b32.cont [9/16] (narrow) %v4201_v59, 64  ;;  %v428_v59 = vld [vmem:[%s4481_s29 + $0x1d8] sm:$0xff]  ;;  %4118 = vmatpush3.bf16.msra.mxu1 %v4117_v35  ;;  %v382_v28 = vld [vmem:[%s4481_s29 + $0x68] sm:$0xff] }
  0x37   : > { %v4622_v35 = vld [vmem:[%s4395_s26 + $0x58] sm:$0xff]  ;;  %4120 = vmatprep.subr.bf16.mxu1 %v4119_v54  ;;  %v4123_v40 = vpack.c.bf16 %v428_v59, %v427_v58  ;;  %4090 = vmatpush3.bf16.msra.mxu0 %v4089_v62  ;;  %v4125_v54 = vpack.c.bf16 %v412_v23, %v411_v16  ;;  %v381_v58 = vld [vmem:[%s4481_s29 + $0x60] sm:$0xff]  ;;  %v4207_v59 = vpack.i.bf16 %v4611_v61, %v4608_v60  ;;  %v415_v61 = vld [vmem:[%s4481_s29 + $0x170] sm:$0xff] }
  0x38   : > { %4274 = vxpose.xlu1.b32.cont [9/16] (narrow) %v4273_v0, 64  ;;  %v379_v0 = vld [vmem:[%s4481_s29 + $0x50] sm:$0xff]  ;;  %4092 = vmatprep.subr.bf16.mxu0 %v4091_v7  ;;  %v4279_v62 = vpack.i.bf16 %v4627_v46, %v4622_v35  ;;  %v4651_v16 = vld [vmem:[%s4395_s26 + $0x160] sm:$0xff]  ;;  %v432_v23 = vld [vmem:[%s4481_s29 + $0x1f8] sm:$0xff] }
  0x39   : > { %v4093_v56 = vpack.c.bf16 %v380_v10, %v379_v0  ;;  %v4127_v0 = vpack.c.bf16 %v430_v47, %v429_v44  ;;  %v400_v10 = vld [vmem:[%s4481_s29 + $0xf8] sm:$0xff]  ;;  %v431_v7 = vld [vmem:[%s4481_s29 + $0x1f0] sm:$0xff] }
  0x3a   : > { %4204 = vxpose.xlu0.b32.cont [10/16] (narrow) %v4203_v41, 64  ;;  %v397_v41 = vld [vmem:[%s4481_s29 + $0xe0] sm:$0xff]  ;;  %4122 = vmatpush3.bf16.msra.mxu1 %v4121_v63  ;;  %v384_v47 = vld [vmem:[%s4481_s29 + $0x78] sm:$0xff] }
  0x3b   : > { %v4095_v29 = vpack.c.bf16 %v398_v45, %v397_v41  ;;  %v4646_v63 = vld [vmem:[%s4395_s26 + $0x60] sm:$0xff]  ;;  %4124 = vmatprep.subr.bf16.mxu1 %v4123_v40  ;;  %4094 = vmatpush3.bf16.msra.mxu0 %v4093_v56  ;;  %v4129_v41 = vpack.c.bf16 %v414_v52, %v413_v53  ;;  %v383_v45 = vld [vmem:[%s4481_s29 + $0x70] sm:$0xff]  ;;  %v416_v60 = vld [vmem:[%s4481_s29 + $0x178] sm:$0xff]  ;;  %v4131_v53 = vpack.c.bf16 %v432_v23, %v431_v7 }
  0x3c   : > { %4276 = vxpose.xlu1.b32.cont [10/16] (narrow) %v4275_v48, 64  ;;  %v4635_v48 = vld [vmem:[%s4395_s26 + $0x1e0] sm:$0xff]  ;;  %v4281_v3 = vpack.i.bf16 %v4651_v16, %v4646_v63  ;;  %v4664_v56 = vld [vmem:[%s4395_s26 + $0xe8] sm:$0xff]  ;;  %v4696_v7 = vld [vmem:[%s4395_s26 + $0xf8] sm:$0xff] }
  0x3d   : > { %6257 = vst [vmem:[#allocation13_spill] sm:$0xff] %v4635_v48  ;;  %v4209_v40 = vpack.i.bf16 %v4635_v48, %v4632_v55  ;;  %4096 = vmatprep.subr.bf16.mxu0 %v4095_v29  ;;  %6258 = vst [vmem:[#allocation14_spill] sm:$0xff] %v4664_v56  ;;  %v4667_v52 = vld [vmem:[%s4395_s26 + $0x1e8] sm:$0xff]  ;;  %v4699_v23 = vld [vmem:[%s4395_s26 + $0x1f8] sm:$0xff] }
  0x3e   : > { %4206 = vxpose.xlu0.b32.cont [11/16] (narrow) %v4205_v6, 64  ;;  %v399_v6 = vld [vmem:[%s4481_s29 + $0xf0] sm:$0xff]  ;;  %4126 = vmatpush3.bf16.msra.mxu1 %v4125_v54  ;;  %6259 = vst [vmem:[#allocation15_spill] sm:$0xff] %v4667_v52  ;;  %v4673_v29 = vld [vmem:[%s4395_s26 + $0x168] sm:$0xff]  ;;  %v4101_v54 = vpack.c.bf16 %v384_v47, %v383_v45  ;;  %6262 = vst [vmem:[#allocation18_spill] sm:$0xff] %v4696_v7  ;;  %v4215_v45 = vpack.i.bf16 %v4699_v23, %v4696_v7 }
  0x3f   : > { %v4099_v44 = vpack.c.bf16 %v400_v10, %v399_v6  ;;  %4128 = vmatprep.subr.bf16.mxu1 %v4127_v0  ;;  %v4680_v0 = vld [vmem:[%s4395_s26 + $0xf0] sm:$0xff]  ;;  %6263 = vst [vmem:[#allocation19_spill] sm:$0xff] %v4699_v23 }
  0x40   : > { %4278 = vxpose.xlu1.b32.cont [11/16] (narrow) %v4277_v34, 64  ;;  %v4097_v34 = vpack.c.bf16 %v382_v28, %v381_v58  ;;  %v4670_v28 = vld [vmem:[%s4395_s26 + $0x68] sm:$0xff]  ;;  %v4133_v58 = vpack.c.bf16 %v416_v60, %v415_v61  ;;  %6260 = vst [vmem:[#allocation16_spill] sm:$0xff] %v4680_v0  ;;  %v4683_v6 = vld [vmem:[%s4395_s26 + $0x1f0] sm:$0xff] }
  0x41   : > { %6261 = vst [vmem:[#allocation17_spill] sm:$0xff] %v4683_v6  ;;  %v4686_v10 = vld [vmem:[%s4395_s26 + $0x70] sm:$0xff]  ;;  %v4213_v61 = vpack.i.bf16 %v4683_v6, %v4680_v0 }
  0x42   : > { %4208 = vxpose.xlu0.b32.cont [12/16] (narrow) %v4207_v59, 64  ;;  %4098 = vmatpush3.bf16.msra.mxu0 %v4097_v34  ;;  %v4211_v59 = vpack.i.bf16 %v4667_v52, %v4664_v56  ;;  %v4689_v60 = vld [vmem:[%s4395_s26 + $0x170] sm:$0xff]  ;;  %v4702_v34 = vld [vmem:[%s4395_s26 + $0x78] sm:$0xff] }
  0x43   : > { %4130 = vmatpush3.bf16.msra.mxu1 %v4129_v41  ;;  %4100 = vmatprep.subr.bf16.mxu0 %v4099_v44  ;;  %v4705_v41 = vld [vmem:[%s4395_s26 + $0x178] sm:$0xff] }
  0x44   : > { %4280 = vxpose.xlu1.b32.cont [12/16] (narrow) %v4279_v62, 64  ;;  %v4283_v62 = vpack.i.bf16 %v4673_v29, %v4670_v28  ;;  %4132 = vmatprep.subr.bf16.mxu1 %v4131_v53 }
  0x46   : > { %4210 = vxpose.xlu0.b32.cont [13/16] (narrow) %v4209_v40, 64  ;;  %4102 = vmatpush3.bf16.msra.mxu0 %v4101_v54  ;;  %v4287_v40 = vpack.i.bf16 %v4705_v41, %v4702_v34 }
  0x47   : > { %4134 = vmatpush3.bf16.msra.mxu1 %v4133_v58 }
  0x48   : > { %4282 = vxpose.xlu1.b32.cont [13/16] (narrow) %v4281_v3, 64  ;;  %v4285_v3 = vpack.i.bf16 %v4689_v60, %v4686_v10 }
  0x4a   : > { %4212 = vxpose.xlu0.b32.cont [14/16] (narrow) %v4211_v59, 64 }
  0x4c   : > { %4284 = vxpose.xlu1.b32.cont [14/16] (narrow) %v4283_v62, 64 }
  0x4e   : > { %4214 = vxpose.xlu0.b32.cont [15/16] (narrow) %v4213_v61, 64 }
  0x50   : > { %4286 = vxpose.xlu1.b32.cont [15/16] (narrow) %v4285_v3, 64 }
  0x52   : > { %4216 = vxpose.xlu0.b32.end [16/16] (narrow) %v4215_v45, 64 }
  0x54   : > { %4288 = vxpose.xlu1.b32.end [16/16] (narrow) %v4287_v40, 64 }
  0x96   : > { %v4217_v44 = vpop.trf.xlu0 }
  0x97   : > { %v4218_v53 = vunpack.i.l.bf16 %v4217_v44  ;;  %v4221_v54 = vunpack.i.h.bf16 %v4217_v44 }
  0x98   : > { %v4289_v47 = vpop.trf.xlu1 }
  0x99   : > { %v4290_v58 = vunpack.i.l.bf16 %v4289_v47  ;;  %v4293_v59 = vunpack.i.h.bf16 %v4289_v47  ;;  %625 = vmatprep.mubr.f32.mxu0 %v4218_v53  ;;  %730 = vmatprep.mubr.f32.mxu1 %v4221_v54 }
  0x9a   : > { %v4222_v62 = vpop.trf.xlu0 }
  0x9b   : > { %626 = vmatmul.mubr.f32.vlgmr.msra.gmra.mrb[0].mxu0 %v4290_v58  ;;  %731 = vmatmul.mubr.f32.vlgmr.msra.gmra.mrb[0].mxu1 %v4293_v59  ;;  %v4223_v6 = vunpack.i.l.bf16 %v4222_v62  ;;  %v4226_v23 = vunpack.i.h.bf16 %v4222_v62 }
  0x9c   : > { %v4294_v61 = vpop.trf.xlu1 }
  0x9d   : > { %v4295_v3 = vunpack.i.l.bf16 %v4294_v61  ;;  %v4298_v7 = vunpack.i.h.bf16 %v4294_v61  ;;  %630 = vmatprep.mubr.f32.mxu0 %v4223_v6  ;;  %735 = vmatprep.mubr.f32.mxu1 %v4226_v23 }
  0x9e   : > { %v4227_v45 = vpop.trf.xlu0 }
  0x9f   : > { %631 = vmatmul.mubr.f32.gmra.mrb[2].mxu0 %v4295_v3  ;;  %736 = vmatmul.mubr.f32.gmra.mrb[2].mxu1 %v4298_v7  ;;  %v4228_v0 = vunpack.i.l.bf16 %v4227_v45  ;;  %v4231_v44 = vunpack.i.h.bf16 %v4227_v45 }
  0xa0   : > { %v4299_v40 = vpop.trf.xlu1 }
  0xa1   : > { %v4300_v52 = vunpack.i.l.bf16 %v4299_v40  ;;  %v4303_v47 = vunpack.i.h.bf16 %v4299_v40  ;;  %635 = vmatprep.mubr.f32.mxu0 %v4228_v0  ;;  %740 = vmatprep.mubr.f32.mxu1 %v4231_v44 }
  0xa2   : > { %v4232_v53 = vpop.trf.xlu0 }
  0xa3   : > { %636 = vmatmul.mubr.f32.gmra.mrb[4].mxu0 %v4300_v52  ;;  %741 = vmatmul.mubr.f32.gmra.mrb[4].mxu1 %v4303_v47  ;;  %v4233_v58 = vunpack.i.l.bf16 %v4232_v53  ;;  %v4236_v59 = vunpack.i.h.bf16 %v4232_v53 }
  0xa4   : > { %v4304_v54 = vpop.trf.xlu1 }
  0xa5   : > { %v4305_v62 = vunpack.i.l.bf16 %v4304_v54  ;;  %v4308_v61 = vunpack.i.h.bf16 %v4304_v54  ;;  %640 = vmatprep.mubr.f32.mxu0 %v4233_v58  ;;  %745 = vmatprep.mubr.f32.mxu1 %v4236_v59 }
  0xa6   : > { %v4237_v6 = vpop.trf.xlu0 }
  0xa7   : > { %641 = vmatmul.mubr.f32.gmra.mrb[6].mxu0 %v4305_v62  ;;  %746 = vmatmul.mubr.f32.gmra.mrb[6].mxu1 %v4308_v61  ;;  %v4238_v23 = vunpack.i.l.bf16 %v4237_v6  ;;  %v4241_v3 = vunpack.i.h.bf16 %v4237_v6 }
  0xa8   : > { %v4309_v7 = vpop.trf.xlu1 }
  0xa9   : > { %v4310_v45 = vunpack.i.l.bf16 %v4309_v7  ;;  %v4313_v40 = vunpack.i.h.bf16 %v4309_v7  ;;  %645 = vmatprep.mubr.f32.mxu0 %v4238_v23  ;;  %750 = vmatprep.mubr.f32.mxu1 %v4241_v3 }
  0xaa   : > { %v4242_v0 = vpop.trf.xlu0 }
  0xab   : > { %646 = vmatmul.mubr.f32.gmra.mrb[8].mxu0 %v4310_v45  ;;  %751 = vmatmul.mubr.f32.gmra.mrb[8].mxu1 %v4313_v40  ;;  %v4243_v44 = vunpack.i.l.bf16 %v4242_v0  ;;  %v4246_v47 = vunpack.i.h.bf16 %v4242_v0 }
  0xac   : > { %v4314_v52 = vpop.trf.xlu1 }
  0xad   : > { %v4315_v53 = vunpack.i.l.bf16 %v4314_v52  ;;  %v4318_v54 = vunpack.i.h.bf16 %v4314_v52  ;;  %650 = vmatprep.mubr.f32.mxu0 %v4243_v44  ;;  %755 = vmatprep.mubr.f32.mxu1 %v4246_v47 }
  0xae   : > { %v4247_v58 = vpop.trf.xlu0 }
  0xaf   : > { %651 = vmatmul.mubr.f32.gmra.mrb[10].mxu0 %v4315_v53  ;;  %756 = vmatmul.mubr.f32.gmra.mrb[10].mxu1 %v4318_v54  ;;  %v4248_v62 = vunpack.i.l.bf16 %v4247_v58  ;;  %v4251_v61 = vunpack.i.h.bf16 %v4247_v58 }
  0xb0   : > { %v4319_v59 = vpop.trf.xlu1 }
  0xb1   : > { %v4320_v6 = vunpack.i.l.bf16 %v4319_v59  ;;  %v4323_v7 = vunpack.i.h.bf16 %v4319_v59  ;;  %655 = vmatprep.mubr.f32.mxu0 %v4248_v62  ;;  %760 = vmatprep.mubr.f32.mxu1 %v4251_v61 }
  0xb2   : > { %v4252_v23 = vpop.trf.xlu0 }
  0xb3   : > { %656 = vmatmul.mubr.f32.gmra.mrb[12].mxu0 %v4320_v6  ;;  %761 = vmatmul.mubr.f32.gmra.mrb[12].mxu1 %v4323_v7  ;;  %v4253_v45 = vunpack.i.l.bf16 %v4252_v23  ;;  %v4256_v40 = vunpack.i.h.bf16 %v4252_v23 }
  0xb4   : > { %v4324_v3 = vpop.trf.xlu1 }
  0xb5   : > { %v4325_v0 = vunpack.i.l.bf16 %v4324_v3  ;;  %v4328_v52 = vunpack.i.h.bf16 %v4324_v3  ;;  %660 = vmatprep.mubr.f32.mxu0 %v4253_v45  ;;  %765 = vmatprep.mubr.f32.mxu1 %v4256_v40  ;;  %v771_v3 = vld [vmem:[%s4719_s9] sm:$0xff]  ;;  %v772_v45 = vld [vmem:[%s4719_s9 + $0x8] sm:$0xff] }
  0xb7   : > { %661 = vmatmul.mubr.f32.gmra.mrb[14].mxu0 %v4325_v0  ;;  %766 = vmatmul.mubr.f32.gmra.mrb[14].mxu1 %v4328_v52 }
  0xb8   : > { %3767 = vmatprep.mubr.msk.f32.mxu0 %vm787_vm0, %v4400_v2  ;;  %3815 = vmatprep.mubr.msk.f32.mxu1 %vm787_vm0, %v4403_v4 }
 0x16e   : > { %v3463_v44 = vpop.f32.mrb[0].mxu0  ;;  %v3519_v47 = vpop.f32.mrb[0].mxu1 }
 0x16f   : > { %v3464_v53 = vpop.f32.mrb[1].mxu0  ;;  %v3520_v54 = vpop.f32.mrb[1].mxu1 }
 0x170   : > { %v3465_v58 = vadd.f32 %v3464_v53, %v3463_v44  ;;  %v3521_v59 = vadd.f32 %v3520_v54, %v3519_v47 }
 0x172   : > { %v733_v62 = vadd.f32 %v3521_v59, %v3465_v58  ;;  %v3466_v61 = vpop.f32.mrb[2].mxu0  ;;  %v3522_v2 = vpop.f32.mrb[2].mxu1 }
 0x173   : > { %v3467_v6 = vpop.f32.mrb[3].mxu0  ;;  %v3523_v7 = vpop.f32.mrb[3].mxu1 }
 0x174   : > { %v3468_v4 = vadd.f32 %v3467_v6, %v3466_v61  ;;  %v3524_v23 = vadd.f32 %v3523_v7, %v3522_v2  ;;  %v779_v53 = vmul.f32 %v771_v3, %v733_v62  ;;  %v773_v7 = vld [vmem:[%s4719_s9 + $0x10] sm:$0xff] }
 0x176   : > { %v738_v40 = vadd.f32 %v3524_v23, %v3468_v4  ;;  %v3469_v0 = vpop.f32.mrb[4].mxu0  ;;  %v3525_v52 = vpop.f32.mrb[4].mxu1  ;;  %v774_v4 = vld [vmem:[%s4719_s9 + $0x18] sm:$0xff] }
 0x177   : > { %v3470_v44 = vpop.f32.mrb[5].mxu0  ;;  %v3526_v47 = vpop.f32.mrb[5].mxu1 }
 0x178   : > { %v780_v54 = vmul.f32 %v772_v45, %v738_v40  ;;  %v3471_v56 = vadd.f32 %v3470_v44, %v3469_v0  ;;  %v3527_v48 = vadd.f32 %v3526_v47, %v3525_v52 }
 0x17a   : > { %v4135_v58 = vpack.c.bf16 %v780_v54, %v779_v53  ;;  %v743_v59 = vadd.f32 %v3527_v48, %v3471_v56  ;;  %v3472_v55 = vpop.f32.mrb[6].mxu0  ;;  %v3528_v1 = vpop.f32.mrb[6].mxu1 }
 0x17b   : > { %v3473_v43 = vpop.f32.mrb[7].mxu0  ;;  %v3529_v61 = vpop.f32.mrb[7].mxu1 }
 0x17c   : > { %v3474_v2 = vadd.f32 %v3473_v43, %v3472_v55  ;;  %v3530_v6 = vadd.f32 %v3529_v61, %v3528_v1  ;;  %4136 = vmatprep.subr.bf16.mxu0 %v4135_v58  ;;  %4167 = vmatprep.subr.bf16.mxu1 %v4135_v58  ;;  %v781_v48 = vmul.f32 %v773_v7, %v743_v59  ;;  %v776_v61 = vld [vmem:[%s4719_s9 + $0x28] sm:$0xff] }
 0x17d   : > { %4138 = vmatpush3.bf16.msra.mxu0 %v4135_v58  ;;  %4171 = vmatpush3.bf16.msra.mxu1 %v4135_v58  ;;  %v775_v58 = vld [vmem:[%s4719_s9 + $0x20] sm:$0xff] }
 0x17e   : > { %v748_v23 = vadd.f32 %v3530_v6, %v3474_v2  ;;  %v3475_v42 = vpop.f32.mrb[8].mxu0  ;;  %v3531_v62 = vpop.f32.mrb[8].mxu1 }
 0x17f   : > { %v3476_v3 = vpop.f32.mrb[9].mxu0  ;;  %v3532_v45 = vpop.f32.mrb[9].mxu1 }
 0x180   : > { %v782_v56 = vmul.f32 %v774_v4, %v748_v23  ;;  %v3477_v40 = vadd.f32 %v3476_v3, %v3475_v42  ;;  %v3533_v0 = vadd.f32 %v3532_v45, %v3531_v62 }
 0x182   : > { %v4139_v52 = vpack.c.bf16 %v782_v56, %v781_v48  ;;  %v753_v43 = vadd.f32 %v3533_v0, %v3477_v40  ;;  %v3478_v1 = vpop.f32.mrb[10].mxu0  ;;  %v3534_v55 = vpop.f32.mrb[10].mxu1 }
 0x183   : > { %v3479_v44 = vpop.f32.mrb[11].mxu0  ;;  %v3535_v47 = vpop.f32.mrb[11].mxu1 }
 0x184   : > { %v3480_v53 = vadd.f32 %v3479_v44, %v3478_v1  ;;  %v3536_v54 = vadd.f32 %v3535_v47, %v3534_v55  ;;  %4140 = vmatprep.subr.bf16.mxu0 %v4139_v52  ;;  %4168 = vmatprep.subr.bf16.mxu1 %v4139_v52  ;;  %v783_v4 = vmul.f32 %v775_v58, %v753_v43  ;;  %v778_v47 = vld [vmem:[%s4719_s9 + $0x38] sm:$0xff]  ;;  %v1430_v43 = vld [vmem:[%s6174_s3] sm:$0xff] }
 0x185   : > { %4142 = vmatpush3.bf16.msra.mxu0 %v4139_v52  ;;  %4172 = vmatpush3.bf16.msra.mxu1 %v4139_v52  ;;  %v777_v52 = vld [vmem:[%s4719_s9 + $0x30] sm:$0xff]  ;;  %v2011_v58 = vld [vmem:[%s6175_s4] sm:$0xff] }
 0x186   : > { %v758_v2 = vadd.f32 %v3536_v54, %v3480_v53  ;;  %v3481_v6 = vpop.f32.mrb[12].mxu0  ;;  %v3537_v59 = vpop.f32.mrb[12].mxu1  ;;  %v1431_v54 = vld [vmem:[%s6174_s3 + $0x8] sm:$0xff] }
 0x187   : > { %v3482_v7 = vpop.f32.mrb[13].mxu0  ;;  %v3538_v42 = vpop.f32.mrb[13].mxu1 }
 0x188   : > { %v784_v23 = vmul.f32 %v776_v61, %v758_v2  ;;  %v3483_v62 = vadd.f32 %v3482_v7, %v3481_v6  ;;  %v3539_v3 = vadd.f32 %v3538_v42, %v3537_v59  ;;  %v2012_v61 = vld [vmem:[%s6175_s4 + $0x8] sm:$0xff]  ;;  %v4151_v7 = vpack.c.bf16 %v1431_v54, %v1430_v43 }
 0x189   : > { %v4159_v42 = vpack.c.bf16 %v2012_v61, %v2011_v58 }
 0x18a   : > { %v4143_v45 = vpack.c.bf16 %v784_v23, %v783_v4  ;;  %v763_v48 = vadd.f32 %v3539_v3, %v3483_v62  ;;  %v3484_v56 = vpop.f32.mrb[14].mxu0  ;;  %v3540_v40 = vpop.f32.mrb[14].mxu1  ;;  %v1432_v4 = vld [vmem:[%s6174_s3 + $0x10] sm:$0xff]  ;;  %v1433_v23 = vld [vmem:[%s6174_s3 + $0x18] sm:$0xff] }
 0x18b   : > { %v3485_v0 = vpop.f32.mrb[15].mxu0  ;;  %v3541_v1 = vpop.f32.mrb[15].mxu1  ;;  %v2013_v62 = vld [vmem:[%s6175_s4 + $0x10] sm:$0xff]  ;;  %v2014_v3 = vld [vmem:[%s6175_s4 + $0x18] sm:$0xff] }
 0x18c   : > { %v3486_v55 = vadd.f32 %v3485_v0, %v3484_v56  ;;  %v3542_v44 = vadd.f32 %v3541_v1, %v3540_v40  ;;  %4144 = vmatprep.subr.bf16.mxu0 %v4143_v45  ;;  %4169 = vmatprep.subr.bf16.mxu1 %v4143_v45  ;;  %v785_v2 = vmul.f32 %v777_v52, %v763_v48 }
 0x18d   : > { %4146 = vmatpush3.bf16.msra.mxu0 %v4143_v45  ;;  %4173 = vmatpush3.bf16.msra.mxu1 %v4143_v45  ;;  %v4155_v45 = vpack.c.bf16 %v1433_v23, %v1432_v4  ;;  %v4163_v48 = vpack.c.bf16 %v2014_v3, %v2013_v62 }
 0x18e   : > { %v768_v53 = vadd.f32 %v3542_v44, %v3486_v55 }
 0x190   : > { %v786_v6 = vmul.f32 %v778_v47, %v768_v53 }
 0x192   : > { %v4147_v59 = vpack.c.bf16 %v786_v6, %v785_v2 }
 0x194   : > { %4148 = vmatprep.subr.bf16.mxu0 %v4147_v59  ;;  %4170 = vmatprep.subr.bf16.mxu1 %v4147_v59 }
 0x195   : > { %4150 = vmatpush3.bf16.msra.mxu0 %v4147_v59  ;;  %4174 = vmatpush3.bf16.msra.mxu1 %v4147_v59 }
 0x196   : > { %4152 = vmatprep.subr.bf16.mxu1 %v4151_v7  ;;  %4160 = vmatprep.subr.bf16.mxu0 %v4159_v42 }
 0x198   : > { %3768 = vmatmul.mubr.msk.f32.vlgmr.msra.gmra.mrb[16].mxu0 %vm787_vm0, %v4410_v8  ;;  %3816 = vmatmul.mubr.msk.f32.vlgmr.msra.gmra.mrb[16].mxu1 %vm787_vm0, %v4413_v9  ;;  %v4329_v8 = vld [vmem:[%s4395_s26 + $0x80] sm:$0xff] }
 0x199   : > { %3770 = vmatprep.mubr.msk.f32.mxu0 %vm787_vm0, %v4424_v14  ;;  %3818 = vmatprep.mubr.msk.f32.mxu1 %vm787_vm0, %v4427_v15  ;;  %v4330_v9 = vld [vmem:[%s4395_s26 + $0x180] sm:$0xff]  ;;  %v4331_v14 = vld [vmem:[%s4395_s26 + $0x88] sm:$0xff] }
 0x19a   : > { %4154 = vmatpush3.bf16.msra.mxu1 %v4151_v7  ;;  %4162 = vmatpush3.bf16.msra.mxu0 %v4159_v42  ;;  %v4332_v15 = vld [vmem:[%s4395_s26 + $0x188] sm:$0xff] }
 0x19b   : > { %4156 = vmatprep.subr.bf16.mxu1 %v4155_v45  ;;  %4164 = vmatprep.subr.bf16.mxu0 %v4163_v48 }
 0x19c   : > { %3771 = vmatmul.mubr.msk.f32.gmra.mrb[18].mxu0 %vm787_vm0, %v4440_v20  ;;  %3819 = vmatmul.mubr.msk.f32.gmra.mrb[18].mxu1 %vm787_vm0, %v4443_v21  ;;  %v6268_v20 = vld [vmem:[#allocation6_spill] sm:$0xff]  ;;  %v6269_v21 = vld [vmem:[#allocation7_spill] sm:$0xff] }
 0x19d   : > { %3773 = vmatprep.mubr.msk.f32.mxu0 %vm787_vm0, %v4456_v26  ;;  %3821 = vmatprep.mubr.msk.f32.mxu1 %vm787_vm0, %v4459_v27  ;;  %v6272_v26 = vld [vmem:[#allocation10_spill] sm:$0xff]  ;;  %v6273_v27 = vld [vmem:[#allocation11_spill] sm:$0xff] }
 0x19e   : > { %4158 = vmatpush3.bf16.msra.mxu1 %v4155_v45  ;;  %4166 = vmatpush3.bf16.msra.mxu0 %v4163_v48 }
 0x1a0   : > { %3774 = vmatmul.mubr.msk.f32.gmra.mrb[20].mxu0 %vm787_vm0, %v4472_v32  ;;  %3822 = vmatmul.mubr.msk.f32.gmra.mrb[20].mxu1 %vm787_vm0, %v4475_v33  ;;  %v6276_v32 = vld [vmem:[#allocation14_spill] sm:$0xff]  ;;  %v6277_v33 = vld [vmem:[#allocation15_spill] sm:$0xff] }
 0x1a1   : > { %3776 = vmatprep.mubr.msk.f32.mxu0 %vm787_vm0, %v4494_v38  ;;  %3824 = vmatprep.mubr.msk.f32.mxu1 %vm787_vm0, %v4497_v39  ;;  %v6280_v38 = vld [vmem:[#allocation18_spill] sm:$0xff]  ;;  %v6281_v39 = vld [vmem:[#allocation19_spill] sm:$0xff] }
 0x1a4   : > { %3777 = vmatmul.mubr.msk.f32.gmra.mrb[22].mxu0 %vm787_vm0, %v4513_v49  ;;  %3825 = vmatmul.mubr.msk.f32.gmra.mrb[22].mxu1 %vm787_vm0, %v4516_v50 }
 0x1a5   : > { %3779 = vmatprep.mubr.msk.f32.mxu0 %vm787_vm0, %v4541_v17  ;;  %3827 = vmatprep.mubr.msk.f32.mxu1 %vm787_vm0, %v4544_v22 }
 0x1a8   : > { %3780 = vmatmul.mubr.msk.f32.gmra.mrb[24].mxu0 %vm787_vm0, %v4574_v5  ;;  %3828 = vmatmul.mubr.msk.f32.gmra.mrb[24].mxu1 %vm787_vm0, %v4579_v11 }
 0x1a9   : > { %3782 = vmatprep.mubr.msk.f32.mxu0 %vm787_vm0, %v4598_v51  ;;  %3830 = vmatprep.mubr.msk.f32.mxu1 %vm787_vm0, %v4603_v57 }
 0x1ac   : > { %3783 = vmatmul.mubr.msk.f32.gmra.mrb[26].mxu0 %vm787_vm0, %v4622_v35  ;;  %3831 = vmatmul.mubr.msk.f32.gmra.mrb[26].mxu1 %vm787_vm0, %v4627_v46 }
 0x1ad   : > { %3785 = vmatprep.mubr.msk.f32.mxu0 %vm787_vm0, %v4646_v63  ;;  %3833 = vmatprep.mubr.msk.f32.mxu1 %vm787_vm0, %v4651_v16 }
 0x1b0   : > { %3786 = vmatmul.mubr.msk.f32.gmra.mrb[28].mxu0 %vm787_vm0, %v4670_v28  ;;  %3834 = vmatmul.mubr.msk.f32.gmra.mrb[28].mxu1 %vm787_vm0, %v4673_v29 }
 0x1b1   : > { %3788 = vmatprep.mubr.msk.f32.mxu0 %vm787_vm0, %v4686_v10  ;;  %3836 = vmatprep.mubr.msk.f32.mxu1 %vm787_vm0, %v4689_v60 }
 0x1b4   : > { %3789 = vmatmul.mubr.msk.f32.gmra.mrb[30].mxu0 %vm787_vm0, %v4702_v34  ;;  %3837 = vmatmul.mubr.msk.f32.gmra.mrb[30].mxu1 %vm787_vm0, %v4705_v41 }
 0x1b5   : > { %3791 = vmatprep.mubr.msk.f32.mxu0 %vm787_vm0, %v4329_v8  ;;  %3839 = vmatprep.mubr.msk.f32.mxu1 %vm787_vm0, %v4330_v9 }
 0x1b8   : > { %3792 = vmatmul.mubr.msk.f32.gmra.mrb[32].mxu0 %vm787_vm0, %v4331_v14  ;;  %3840 = vmatmul.mubr.msk.f32.gmra.mrb[32].mxu1 %vm787_vm0, %v4332_v15 }
 0x1b9   : > { %3794 = vmatprep.mubr.msk.f32.mxu0 %vm787_vm0, %v4418_v12  ;;  %3842 = vmatprep.mubr.msk.f32.mxu1 %vm787_vm0, %v4421_v13  ;;  %v6264_v12 = vld [vmem:[#allocation2_spill] sm:$0xff]  ;;  %v6265_v13 = vld [vmem:[#allocation3_spill] sm:$0xff] }
 0x1bc   : > { %3795 = vmatmul.mubr.msk.f32.gmra.mrb[34].mxu0 %vm787_vm0, %v4434_v18  ;;  %3843 = vmatmul.mubr.msk.f32.gmra.mrb[34].mxu1 %vm787_vm0, %v4437_v19  ;;  %v6266_v18 = vld [vmem:[#allocation4_spill] sm:$0xff]  ;;  %v6267_v19 = vld [vmem:[#allocation5_spill] sm:$0xff] }
 0x1bd   : > { %3797 = vmatprep.mubr.msk.f32.mxu0 %vm787_vm0, %v4450_v24  ;;  %3845 = vmatprep.mubr.msk.f32.mxu1 %vm787_vm0, %v4453_v25  ;;  %v6270_v24 = vld [vmem:[#allocation8_spill] sm:$0xff]  ;;  %v6271_v25 = vld [vmem:[#allocation9_spill] sm:$0xff] }
 0x1c0   : > { %3798 = vmatmul.mubr.msk.f32.gmra.mrb[36].mxu0 %vm787_vm0, %v4466_v30  ;;  %3846 = vmatmul.mubr.msk.f32.gmra.mrb[36].mxu1 %vm787_vm0, %v4469_v31  ;;  %v6274_v30 = vld [vmem:[#allocation12_spill] sm:$0xff]  ;;  %v6275_v31 = vld [vmem:[#allocation13_spill] sm:$0xff] }
 0x1c1   : > { %3800 = vmatprep.mubr.msk.f32.mxu0 %vm787_vm0, %v4488_v36  ;;  %3848 = vmatprep.mubr.msk.f32.mxu1 %vm787_vm0, %v4491_v37  ;;  %v6278_v36 = vld [vmem:[#allocation16_spill] sm:$0xff]  ;;  %v6279_v37 = vld [vmem:[#allocation17_spill] sm:$0xff] }
 0x1c4   : > { %3801 = vmatmul.mubr.msk.f32.gmra.mrb[38].mxu0 %vm787_vm0, %v6264_v12  ;;  %3849 = vmatmul.mubr.msk.f32.gmra.mrb[38].mxu1 %vm787_vm0, %v6265_v13 }
 0x1c5   : > { %3803 = vmatprep.mubr.msk.f32.mxu0 %vm787_vm0, %v6266_v18  ;;  %3851 = vmatprep.mubr.msk.f32.mxu1 %vm787_vm0, %v6267_v19 }
 0x1c8   : > { %3804 = vmatmul.mubr.msk.f32.gmra.mrb[40].mxu0 %vm787_vm0, %v6268_v20  ;;  %3852 = vmatmul.mubr.msk.f32.gmra.mrb[40].mxu1 %vm787_vm0, %v6269_v21 }
 0x1c9   : > { %3806 = vmatprep.mubr.msk.f32.mxu0 %vm787_vm0, %v6270_v24  ;;  %3854 = vmatprep.mubr.msk.f32.mxu1 %vm787_vm0, %v6271_v25 }
 0x1cc   : > { %3807 = vmatmul.mubr.msk.f32.gmra.mrb[42].mxu0 %vm787_vm0, %v6272_v26  ;;  %3855 = vmatmul.mubr.msk.f32.gmra.mrb[42].mxu1 %vm787_vm0, %v6273_v27 }
 0x1cd   : > { %3809 = vmatprep.mubr.msk.f32.mxu0 %vm787_vm0, %v6274_v30  ;;  %3857 = vmatprep.mubr.msk.f32.mxu1 %vm787_vm0, %v6275_v31 }
 0x1d0   : > { %3810 = vmatmul.mubr.msk.f32.gmra.mrb[44].mxu0 %vm787_vm0, %v6276_v32  ;;  %3858 = vmatmul.mubr.msk.f32.gmra.mrb[44].mxu1 %vm787_vm0, %v6277_v33 }
 0x1d1   : > { %3812 = vmatprep.mubr.msk.f32.mxu0 %vm787_vm0, %v6278_v36  ;;  %3860 = vmatprep.mubr.msk.f32.mxu1 %vm787_vm0, %v6279_v37 }
 0x1d4   : > { %3813 = vmatmul.mubr.msk.f32.gmra.mrb[46].mxu0 %vm787_vm0, %v6280_v38  ;;  %3861 = vmatmul.mubr.msk.f32.gmra.mrb[46].mxu1 %vm787_vm0, %v6281_v39 }
 0x26b   : > { %v4883_v49 = vpop.f32.mrb[16].mxu0  ;;  %v4885_v50 = vpop.f32.mrb[16].mxu1 }
 0x26c   : > { %6282 = vst [vmem:[#allocation2_spill] sm:$0xff] %v4885_v50  ;;  %1367 = vst.msk [vmem:[%s4881_s30 + $0x8] sm:$0xff] %vm1365_vm1, %v4883_v49  ;;  %v4890_v17 = vpop.f32.mrb[17].mxu0  ;;  %v4895_v22 = vpop.f32.mrb[17].mxu1 }
 0x26d   : > { %1399 = vst.msk [vmem:[%s4881_s30 + $0x108] sm:$0xff] %vm1365_vm1, %v4885_v50  ;;  %6283 = vst [vmem:[#allocation3_spill] sm:$0xff] %v4895_v22  ;;  %3871 = vmatprep.mubr.msk.f32.mxu1 %vm1365_vm1, %v4890_v17  ;;  %3975 = vmatprep.mubr.msk.f32.mxu0 %vm1365_vm1, %v4890_v17 }
 0x26e   : > { %1366 = vst.msk [vmem:[%s4881_s30] sm:$0xff] %vm1365_vm1, %v4890_v17  ;;  %1398 = vst.msk [vmem:[%s4881_s30 + $0x100] sm:$0xff] %vm1365_vm1, %v4895_v22  ;;  %3872 = vmatmul.mubr.msk.f32.vlgmr.msra.gmra.mrb[48].mxu1 %vm1365_vm1, %v4883_v49  ;;  %3976 = vmatmul.mubr.msk.f32.vlgmr.msra.gmra.mrb[48].mxu0 %vm1365_vm1, %v4883_v49 }
 0x26f   : > { %v4911_v5 = vpop.f32.mrb[18].mxu0  ;;  %v4913_v11 = vpop.f32.mrb[18].mxu1 }
 0x270   : > { %6284 = vst [vmem:[#allocation4_spill] sm:$0xff] %v4913_v11  ;;  %1369 = vst.msk [vmem:[%s4881_s30 + $0x18] sm:$0xff] %vm1365_vm1, %v4911_v5  ;;  %v4918_v51 = vpop.f32.mrb[19].mxu0  ;;  %v4923_v57 = vpop.f32.mrb[19].mxu1 }
 0x271   : > { %1401 = vst.msk [vmem:[%s4881_s30 + $0x118] sm:$0xff] %vm1365_vm1, %v4913_v11  ;;  %6285 = vst [vmem:[#allocation5_spill] sm:$0xff] %v4923_v57  ;;  %3874 = vmatprep.mubr.msk.f32.mxu1 %vm1365_vm1, %v4918_v51  ;;  %3978 = vmatprep.mubr.msk.f32.mxu0 %vm1365_vm1, %v4918_v51 }
 0x272   : > { %1368 = vst.msk [vmem:[%s4881_s30 + $0x10] sm:$0xff] %vm1365_vm1, %v4918_v51  ;;  %1400 = vst.msk [vmem:[%s4881_s30 + $0x110] sm:$0xff] %vm1365_vm1, %v4923_v57  ;;  %3875 = vmatmul.mubr.msk.f32.gmra.mrb[50].mxu1 %vm1365_vm1, %v4911_v5  ;;  %3979 = vmatmul.mubr.msk.f32.gmra.mrb[50].mxu0 %vm1365_vm1, %v4911_v5 }
 0x273   : > { %v4939_v35 = vpop.f32.mrb[20].mxu0  ;;  %v4941_v46 = vpop.f32.mrb[20].mxu1 }
 0x274   : > { %6286 = vst [vmem:[#allocation6_spill] sm:$0xff] %v4941_v46  ;;  %1371 = vst.msk [vmem:[%s4881_s30 + $0x28] sm:$0xff] %vm1365_vm1, %v4939_v35  ;;  %v4946_v63 = vpop.f32.mrb[21].mxu0  ;;  %v4951_v16 = vpop.f32.mrb[21].mxu1 }
 0x275   : > { %1403 = vst.msk [vmem:[%s4881_s30 + $0x128] sm:$0xff] %vm1365_vm1, %v4941_v46  ;;  %6287 = vst [vmem:[#allocation7_spill] sm:$0xff] %v4951_v16  ;;  %3877 = vmatprep.mubr.msk.f32.mxu1 %vm1365_vm1, %v4946_v63  ;;  %3981 = vmatprep.mubr.msk.f32.mxu0 %vm1365_vm1, %v4946_v63 }
 0x276   : > { %1370 = vst.msk [vmem:[%s4881_s30 + $0x20] sm:$0xff] %vm1365_vm1, %v4946_v63  ;;  %1402 = vst.msk [vmem:[%s4881_s30 + $0x120] sm:$0xff] %vm1365_vm1, %v4951_v16  ;;  %3878 = vmatmul.mubr.msk.f32.gmra.mrb[52].mxu1 %vm1365_vm1, %v4939_v35  ;;  %3982 = vmatmul.mubr.msk.f32.gmra.mrb[52].mxu0 %vm1365_vm1, %v4939_v35 }
 0x277   : > { %v4967_v28 = vpop.f32.mrb[22].mxu0  ;;  %v4969_v29 = vpop.f32.mrb[22].mxu1 }
 0x278   : > { %6288 = vst [vmem:[#allocation8_spill] sm:$0xff] %v4969_v29  ;;  %1373 = vst.msk [vmem:[%s4881_s30 + $0x38] sm:$0xff] %vm1365_vm1, %v4967_v28  ;;  %v4974_v10 = vpop.f32.mrb[23].mxu0  ;;  %v4979_v60 = vpop.f32.mrb[23].mxu1 }
 0x279   : > { %1405 = vst.msk [vmem:[%s4881_s30 + $0x138] sm:$0xff] %vm1365_vm1, %v4969_v29  ;;  %6289 = vst [vmem:[#allocation9_spill] sm:$0xff] %v4979_v60  ;;  %3880 = vmatprep.mubr.msk.f32.mxu1 %vm1365_vm1, %v4974_v10  ;;  %3984 = vmatprep.mubr.msk.f32.mxu0 %vm1365_vm1, %v4974_v10 }
 0x27a   : > { %1372 = vst.msk [vmem:[%s4881_s30 + $0x30] sm:$0xff] %vm1365_vm1, %v4974_v10  ;;  %1404 = vst.msk [vmem:[%s4881_s30 + $0x130] sm:$0xff] %vm1365_vm1, %v4979_v60  ;;  %3881 = vmatmul.mubr.msk.f32.gmra.mrb[54].mxu1 %vm1365_vm1, %v4967_v28  ;;  %3985 = vmatmul.mubr.msk.f32.gmra.mrb[54].mxu0 %vm1365_vm1, %v4967_v28 }
 0x27b   : > { %v4995_v34 = vpop.f32.mrb[24].mxu0  ;;  %v4997_v41 = vpop.f32.mrb[24].mxu1 }
 0x27c   : > { %6290 = vst [vmem:[#allocation10_spill] sm:$0xff] %v4997_v41  ;;  %1375 = vst.msk [vmem:[%s4881_s30 + $0x48] sm:$0xff] %vm1365_vm1, %v4995_v34  ;;  %v5002_v56 = vpop.f32.mrb[25].mxu0  ;;  %v5007_v40 = vpop.f32.mrb[25].mxu1 }
 0x27d   : > { %1407 = vst.msk [vmem:[%s4881_s30 + $0x148] sm:$0xff] %vm1365_vm1, %v4997_v41  ;;  %6291 = vst [vmem:[#allocation11_spill] sm:$0xff] %v5007_v40  ;;  %3883 = vmatprep.mubr.msk.f32.mxu1 %vm1365_vm1, %v5002_v56  ;;  %3987 = vmatprep.mubr.msk.f32.mxu0 %vm1365_vm1, %v5002_v56 }
 0x27e   : > { %1374 = vst.msk [vmem:[%s4881_s30 + $0x40] sm:$0xff] %vm1365_vm1, %v5002_v56  ;;  %1406 = vst.msk [vmem:[%s4881_s30 + $0x140] sm:$0xff] %vm1365_vm1, %v5007_v40  ;;  %3884 = vmatmul.mubr.msk.f32.gmra.mrb[56].mxu1 %vm1365_vm1, %v4995_v34  ;;  %3988 = vmatmul.mubr.msk.f32.gmra.mrb[56].mxu0 %vm1365_vm1, %v4995_v34 }
 0x27f   : > { %v5023_v0 = vpop.f32.mrb[26].mxu0  ;;  %v5025_v1 = vpop.f32.mrb[26].mxu1 }
 0x280   : > { %6292 = vst [vmem:[#allocation12_spill] sm:$0xff] %v5025_v1  ;;  %1377 = vst.msk [vmem:[%s4881_s30 + $0x58] sm:$0xff] %vm1365_vm1, %v5023_v0  ;;  %v5030_v55 = vpop.f32.mrb[27].mxu0  ;;  %v5035_v44 = vpop.f32.mrb[27].mxu1 }
 0x281   : > { %1409 = vst.msk [vmem:[%s4881_s30 + $0x158] sm:$0xff] %vm1365_vm1, %v5025_v1  ;;  %6293 = vst [vmem:[#allocation13_spill] sm:$0xff] %v5035_v44  ;;  %3886 = vmatprep.mubr.msk.f32.mxu1 %vm1365_vm1, %v5030_v55  ;;  %3990 = vmatprep.mubr.msk.f32.mxu0 %vm1365_vm1, %v5030_v55 }
 0x282   : > { %1376 = vst.msk [vmem:[%s4881_s30 + $0x50] sm:$0xff] %vm1365_vm1, %v5030_v55  ;;  %1408 = vst.msk [vmem:[%s4881_s30 + $0x150] sm:$0xff] %vm1365_vm1, %v5035_v44  ;;  %3887 = vmatmul.mubr.msk.f32.gmra.mrb[58].mxu1 %vm1365_vm1, %v5023_v0  ;;  %3991 = vmatmul.mubr.msk.f32.gmra.mrb[58].mxu0 %vm1365_vm1, %v5023_v0 }
 0x283   : > { %v5051_v52 = vpop.f32.mrb[28].mxu0  ;;  %v5053_v47 = vpop.f32.mrb[28].mxu1 }
 0x284   : > { %6294 = vst [vmem:[#allocation14_spill] sm:$0xff] %v5053_v47  ;;  %1379 = vst.msk [vmem:[%s4881_s30 + $0x68] sm:$0xff] %vm1365_vm1, %v5051_v52  ;;  %v5058_v53 = vpop.f32.mrb[29].mxu0  ;;  %v5063_v43 = vpop.f32.mrb[29].mxu1 }
 0x285   : > { %1411 = vst.msk [vmem:[%s4881_s30 + $0x168] sm:$0xff] %vm1365_vm1, %v5053_v47  ;;  %6295 = vst [vmem:[#allocation15_spill] sm:$0xff] %v5063_v43  ;;  %3889 = vmatprep.mubr.msk.f32.mxu1 %vm1365_vm1, %v5058_v53  ;;  %3993 = vmatprep.mubr.msk.f32.mxu0 %vm1365_vm1, %v5058_v53 }
 0x286   : > { %1378 = vst.msk [vmem:[%s4881_s30 + $0x60] sm:$0xff] %vm1365_vm1, %v5058_v53  ;;  %1410 = vst.msk [vmem:[%s4881_s30 + $0x160] sm:$0xff] %vm1365_vm1, %v5063_v43  ;;  %3890 = vmatmul.mubr.msk.f32.gmra.mrb[60].mxu1 %vm1365_vm1, %v5051_v52  ;;  %3994 = vmatmul.mubr.msk.f32.gmra.mrb[60].mxu0 %vm1365_vm1, %v5051_v52 }
 0x287   : > { %v5079_v54 = vpop.f32.mrb[30].mxu0  ;;  %v5081_v58 = vpop.f32.mrb[30].mxu1 }
 0x288   : > { %6296 = vst [vmem:[#allocation16_spill] sm:$0xff] %v5079_v54  ;;  %6297 = vst [vmem:[#allocation17_spill] sm:$0xff] %v5081_v58  ;;  %v5086_v61 = vpop.f32.mrb[31].mxu0  ;;  %v5091_v2 = vpop.f32.mrb[31].mxu1 }
 0x289   : > { %1381 = vst.msk [vmem:[%s4881_s30 + $0x78] sm:$0xff] %vm1365_vm1, %v5079_v54  ;;  %6298 = vst [vmem:[#allocation18_spill] sm:$0xff] %v5086_v61  ;;  %3892 = vmatprep.mubr.msk.f32.mxu1 %vm1365_vm1, %v5086_v61  ;;  %3996 = vmatprep.mubr.msk.f32.mxu0 %vm1365_vm1, %v5086_v61 }
 0x28a   : > { %1413 = vst.msk [vmem:[%s4881_s30 + $0x178] sm:$0xff] %vm1365_vm1, %v5081_v58  ;;  %6299 = vst [vmem:[#allocation19_spill] sm:$0xff] %v5091_v2  ;;  %3893 = vmatmul.mubr.msk.f32.gmra.mrb[62].mxu1 %vm1365_vm1, %v5079_v54  ;;  %3997 = vmatmul.mubr.msk.f32.gmra.mrb[62].mxu0 %vm1365_vm1, %v5079_v54 }
 0x28b   : > { %1380 = vst.msk [vmem:[%s4881_s30 + $0x70] sm:$0xff] %vm1365_vm1, %v5086_v61  ;;  %1412 = vst.msk [vmem:[%s4881_s30 + $0x170] sm:$0xff] %vm1365_vm1, %v5091_v2  ;;  %v5107_v6 = vpop.f32.mrb[32].mxu0  ;;  %v5109_v59 = vpop.f32.mrb[32].mxu1 }
 0x28c   : > { %6300 = vst [vmem:[#allocation20_spill] sm:$0xff] %v5107_v6  ;;  %6301 = vst [vmem:[#allocation21_spill] sm:$0xff] %v5109_v59  ;;  %v5114_v7 = vpop.f32.mrb[33].mxu0  ;;  %v5119_v42 = vpop.f32.mrb[33].mxu1 }
 0x28d   : > { %1383 = vst.msk [vmem:[%s4881_s30 + $0x88] sm:$0xff] %vm1365_vm1, %v5107_v6  ;;  %6302 = vst [vmem:[#allocation22_spill] sm:$0xff] %v5114_v7  ;;  %3895 = vmatprep.mubr.msk.f32.mxu1 %vm1365_vm1, %v5114_v7  ;;  %3999 = vmatprep.mubr.msk.f32.mxu0 %vm1365_vm1, %v5114_v7 }
 0x28e   : > { %1415 = vst.msk [vmem:[%s4881_s30 + $0x188] sm:$0xff] %vm1365_vm1, %v5109_v59  ;;  %6303 = vst [vmem:[#allocation23_spill] sm:$0xff] %v5119_v42  ;;  %3896 = vmatmul.mubr.msk.f32.gmra.mrb[64].mxu1 %vm1365_vm1, %v5107_v6  ;;  %4000 = vmatmul.mubr.msk.f32.gmra.mrb[64].mxu0 %vm1365_vm1, %v5107_v6 }
 0x28f   : > { %1382 = vst.msk [vmem:[%s4881_s30 + $0x80] sm:$0xff] %vm1365_vm1, %v5114_v7  ;;  %1414 = vst.msk [vmem:[%s4881_s30 + $0x180] sm:$0xff] %vm1365_vm1, %v5119_v42  ;;  %v5135_v4 = vpop.f32.mrb[34].mxu0  ;;  %v5137_v23 = vpop.f32.mrb[34].mxu1 }
 0x290   : > { %6304 = vst [vmem:[#allocation24_spill] sm:$0xff] %v5135_v4  ;;  %6305 = vst [vmem:[#allocation25_spill] sm:$0xff] %v5137_v23  ;;  %v5142_v62 = vpop.f32.mrb[35].mxu0  ;;  %v5147_v3 = vpop.f32.mrb[35].mxu1 }
 0x291   : > { %1385 = vst.msk [vmem:[%s4881_s30 + $0x98] sm:$0xff] %vm1365_vm1, %v5135_v4  ;;  %6306 = vst [vmem:[#allocation26_spill] sm:$0xff] %v5142_v62  ;;  %3898 = vmatprep.mubr.msk.f32.mxu1 %vm1365_vm1, %v5142_v62  ;;  %4002 = vmatprep.mubr.msk.f32.mxu0 %vm1365_vm1, %v5142_v62 }
 0x292   : > { %1417 = vst.msk [vmem:[%s4881_s30 + $0x198] sm:$0xff] %vm1365_vm1, %v5137_v23  ;;  %6307 = vst [vmem:[#allocation27_spill] sm:$0xff] %v5147_v3  ;;  %3899 = vmatmul.mubr.msk.f32.gmra.mrb[66].mxu1 %vm1365_vm1, %v5135_v4  ;;  %4003 = vmatmul.mubr.msk.f32.gmra.mrb[66].mxu0 %vm1365_vm1, %v5135_v4 }
 0x293   : > { %1384 = vst.msk [vmem:[%s4881_s30 + $0x90] sm:$0xff] %vm1365_vm1, %v5142_v62  ;;  %1416 = vst.msk [vmem:[%s4881_s30 + $0x190] sm:$0xff] %vm1365_vm1, %v5147_v3  ;;  %v5163_v45 = vpop.f32.mrb[36].mxu0  ;;  %v5165_v48 = vpop.f32.mrb[36].mxu1 }
 0x294   : > { %6308 = vst [vmem:[#allocation28_spill] sm:$0xff] %v5163_v45  ;;  %6309 = vst [vmem:[#allocation29_spill] sm:$0xff] %v5165_v48  ;;  %v5170_v8 = vpop.f32.mrb[37].mxu0  ;;  %v5175_v9 = vpop.f32.mrb[37].mxu1 }
 0x295   : > { %1387 = vst.msk [vmem:[%s4881_s30 + $0xa8] sm:$0xff] %vm1365_vm1, %v5163_v45  ;;  %6310 = vst [vmem:[#allocation30_spill] sm:$0xff] %v5170_v8  ;;  %3901 = vmatprep.mubr.msk.f32.mxu1 %vm1365_vm1, %v5170_v8  ;;  %4005 = vmatprep.mubr.msk.f32.mxu0 %vm1365_vm1, %v5170_v8 }
 0x296   : > { %1419 = vst.msk [vmem:[%s4881_s30 + $0x1a8] sm:$0xff] %vm1365_vm1, %v5165_v48  ;;  %6311 = vst [vmem:[#allocation31_spill] sm:$0xff] %v5175_v9  ;;  %3902 = vmatmul.mubr.msk.f32.gmra.mrb[68].mxu1 %vm1365_vm1, %v5163_v45  ;;  %4006 = vmatmul.mubr.msk.f32.gmra.mrb[68].mxu0 %vm1365_vm1, %v5163_v45 }
 0x297   : > { %1386 = vst.msk [vmem:[%s4881_s30 + $0xa0] sm:$0xff] %vm1365_vm1, %v5170_v8  ;;  %1418 = vst.msk [vmem:[%s4881_s30 + $0x1a0] sm:$0xff] %vm1365_vm1, %v5175_v9  ;;  %v5191_v14 = vpop.f32.mrb[38].mxu0  ;;  %v5193_v15 = vpop.f32.mrb[38].mxu1 }
 0x298   : > { %6312 = vst [vmem:[#allocation32_spill] sm:$0xff] %v5191_v14  ;;  %6313 = vst [vmem:[#allocation33_spill] sm:$0xff] %v5193_v15  ;;  %v5198_v12 = vpop.f32.mrb[39].mxu0  ;;  %v5203_v13 = vpop.f32.mrb[39].mxu1 }
 0x299   : > { %1389 = vst.msk [vmem:[%s4881_s30 + $0xb8] sm:$0xff] %vm1365_vm1, %v5191_v14  ;;  %6314 = vst [vmem:[#allocation34_spill] sm:$0xff] %v5198_v12  ;;  %3904 = vmatprep.mubr.msk.f32.mxu1 %vm1365_vm1, %v5198_v12  ;;  %4008 = vmatprep.mubr.msk.f32.mxu0 %vm1365_vm1, %v5198_v12 }
 0x29a   : > { %1421 = vst.msk [vmem:[%s4881_s30 + $0x1b8] sm:$0xff] %vm1365_vm1, %v5193_v15  ;;  %6315 = vst [vmem:[#allocation35_spill] sm:$0xff] %v5203_v13  ;;  %3905 = vmatmul.mubr.msk.f32.gmra.mrb[70].mxu1 %vm1365_vm1, %v5191_v14  ;;  %4009 = vmatmul.mubr.msk.f32.gmra.mrb[70].mxu0 %vm1365_vm1, %v5191_v14 }
 0x29b   : > { %1388 = vst.msk [vmem:[%s4881_s30 + $0xb0] sm:$0xff] %vm1365_vm1, %v5198_v12  ;;  %1420 = vst.msk [vmem:[%s4881_s30 + $0x1b0] sm:$0xff] %vm1365_vm1, %v5203_v13  ;;  %v5219_v18 = vpop.f32.mrb[40].mxu0  ;;  %v5221_v19 = vpop.f32.mrb[40].mxu1 }
 0x29c   : > { %6316 = vst [vmem:[#allocation36_spill] sm:$0xff] %v5219_v18  ;;  %6317 = vst [vmem:[#allocation37_spill] sm:$0xff] %v5221_v19  ;;  %v5226_v20 = vpop.f32.mrb[41].mxu0  ;;  %v5231_v21 = vpop.f32.mrb[41].mxu1 }
 0x29d   : > { %1391 = vst.msk [vmem:[%s4881_s30 + $0xc8] sm:$0xff] %vm1365_vm1, %v5219_v18  ;;  %6318 = vst [vmem:[#allocation38_spill] sm:$0xff] %v5226_v20  ;;  %3907 = vmatprep.mubr.msk.f32.mxu1 %vm1365_vm1, %v5226_v20  ;;  %4011 = vmatprep.mubr.msk.f32.mxu0 %vm1365_vm1, %v5226_v20 }
 0x29e   : > { %1423 = vst.msk [vmem:[%s4881_s30 + $0x1c8] sm:$0xff] %vm1365_vm1, %v5221_v19  ;;  %6319 = vst [vmem:[#allocation39_spill] sm:$0xff] %v5231_v21  ;;  %3908 = vmatmul.mubr.msk.f32.gmra.mrb[72].mxu1 %vm1365_vm1, %v5219_v18  ;;  %4012 = vmatmul.mubr.msk.f32.gmra.mrb[72].mxu0 %vm1365_vm1, %v5219_v18 }
 0x29f   : > { %1390 = vst.msk [vmem:[%s4881_s30 + $0xc0] sm:$0xff] %vm1365_vm1, %v5226_v20  ;;  %1422 = vst.msk [vmem:[%s4881_s30 + $0x1c0] sm:$0xff] %vm1365_vm1, %v5231_v21  ;;  %v5247_v24 = vpop.f32.mrb[42].mxu0  ;;  %v5249_v25 = vpop.f32.mrb[42].mxu1 }
 0x2a0   : > { %6320 = vst [vmem:[#allocation40_spill] sm:$0xff] %v5247_v24  ;;  %6321 = vst [vmem:[#allocation41_spill] sm:$0xff] %v5249_v25  ;;  %v5254_v26 = vpop.f32.mrb[43].mxu0  ;;  %v5259_v27 = vpop.f32.mrb[43].mxu1 }
 0x2a1   : > { %1393 = vst.msk [vmem:[%s4881_s30 + $0xd8] sm:$0xff] %vm1365_vm1, %v5247_v24  ;;  %6322 = vst [vmem:[#allocation42_spill] sm:$0xff] %v5254_v26  ;;  %3910 = vmatprep.mubr.msk.f32.mxu1 %vm1365_vm1, %v5254_v26  ;;  %4014 = vmatprep.mubr.msk.f32.mxu0 %vm1365_vm1, %v5254_v26 }
 0x2a2   : > { %1425 = vst.msk [vmem:[%s4881_s30 + $0x1d8] sm:$0xff] %vm1365_vm1, %v5249_v25  ;;  %6323 = vst [vmem:[#allocation43_spill] sm:$0xff] %v5259_v27  ;;  %3911 = vmatmul.mubr.msk.f32.gmra.mrb[74].mxu1 %vm1365_vm1, %v5247_v24  ;;  %4015 = vmatmul.mubr.msk.f32.gmra.mrb[74].mxu0 %vm1365_vm1, %v5247_v24 }
 0x2a3   : > { %1392 = vst.msk [vmem:[%s4881_s30 + $0xd0] sm:$0xff] %vm1365_vm1, %v5254_v26  ;;  %1424 = vst.msk [vmem:[%s4881_s30 + $0x1d0] sm:$0xff] %vm1365_vm1, %v5259_v27  ;;  %v5275_v30 = vpop.f32.mrb[44].mxu0  ;;  %v5277_v31 = vpop.f32.mrb[44].mxu1 }
 0x2a4   : > { %6324 = vst [vmem:[#allocation44_spill] sm:$0xff] %v5275_v30  ;;  %6325 = vst [vmem:[#allocation45_spill] sm:$0xff] %v5277_v31  ;;  %v5282_v32 = vpop.f32.mrb[45].mxu0  ;;  %v5287_v33 = vpop.f32.mrb[45].mxu1 }
 0x2a5   : > { %1395 = vst.msk [vmem:[%s4881_s30 + $0xe8] sm:$0xff] %vm1365_vm1, %v5275_v30  ;;  %6326 = vst [vmem:[#allocation46_spill] sm:$0xff] %v5282_v32  ;;  %3913 = vmatprep.mubr.msk.f32.mxu1 %vm1365_vm1, %v5282_v32  ;;  %4017 = vmatprep.mubr.msk.f32.mxu0 %vm1365_vm1, %v5282_v32 }
 0x2a6   : > { %1427 = vst.msk [vmem:[%s4881_s30 + $0x1e8] sm:$0xff] %vm1365_vm1, %v5277_v31  ;;  %6327 = vst [vmem:[#allocation47_spill] sm:$0xff] %v5287_v33  ;;  %3914 = vmatmul.mubr.msk.f32.gmra.mrb[76].mxu1 %vm1365_vm1, %v5275_v30  ;;  %4018 = vmatmul.mubr.msk.f32.gmra.mrb[76].mxu0 %vm1365_vm1, %v5275_v30 }
 0x2a7   : > { %1394 = vst.msk [vmem:[%s4881_s30 + $0xe0] sm:$0xff] %vm1365_vm1, %v5282_v32  ;;  %1426 = vst.msk [vmem:[%s4881_s30 + $0x1e0] sm:$0xff] %vm1365_vm1, %v5287_v33  ;;  %v5303_v36 = vpop.f32.mrb[46].mxu0  ;;  %v5305_v37 = vpop.f32.mrb[46].mxu1 }
 0x2a8   : > { %6328 = vst [vmem:[#allocation48_spill] sm:$0xff] %v5303_v36  ;;  %6329 = vst [vmem:[#allocation49_spill] sm:$0xff] %v5305_v37  ;;  %v5310_v38 = vpop.f32.mrb[47].mxu0  ;;  %v5315_v39 = vpop.f32.mrb[47].mxu1 }
 0x2a9   : > { %1397 = vst.msk [vmem:[%s4881_s30 + $0xf8] sm:$0xff] %vm1365_vm1, %v5303_v36  ;;  %6330 = vst [vmem:[#allocation50_spill] sm:$0xff] %v5310_v38  ;;  %3916 = vmatprep.mubr.msk.f32.mxu1 %vm1365_vm1, %v5310_v38  ;;  %4020 = vmatprep.mubr.msk.f32.mxu0 %vm1365_vm1, %v5310_v38 }
 0x2aa   : > { %1429 = vst.msk [vmem:[%s4881_s30 + $0x1f8] sm:$0xff] %vm1365_vm1, %v5305_v37  ;;  %6331 = vst [vmem:[#allocation51_spill] sm:$0xff] %v5315_v39  ;;  %3917 = vmatmul.mubr.msk.f32.gmra.mrb[78].mxu1 %vm1365_vm1, %v5303_v36  ;;  %4021 = vmatmul.mubr.msk.f32.gmra.mrb[78].mxu0 %vm1365_vm1, %v5303_v36 }
 0x2ab   : > { %1396 = vst.msk [vmem:[%s4881_s30 + $0xf0] sm:$0xff] %vm1365_vm1, %v5310_v38  ;;  %1428 = vst.msk [vmem:[%s4881_s30 + $0x1f0] sm:$0xff] %vm1365_vm1, %v5315_v39  ;;  %3919 = vmatprep.mubr.msk.f32.mxu1 %vm1365_vm1, %v4895_v22  ;;  %4023 = vmatprep.mubr.msk.f32.mxu0 %vm1365_vm1, %v4895_v22 }
 0x2ae   : > { %3920 = vmatmul.mubr.msk.f32.gmra.mrb[80].mxu1 %vm1365_vm1, %v4885_v50  ;;  %4024 = vmatmul.mubr.msk.f32.gmra.mrb[80].mxu0 %vm1365_vm1, %v4885_v50 }
 0x2af   : > { %3922 = vmatprep.mubr.msk.f32.mxu1 %vm1365_vm1, %v4923_v57  ;;  %4026 = vmatprep.mubr.msk.f32.mxu0 %vm1365_vm1, %v4923_v57 }
 0x2b2   : > { %3923 = vmatmul.mubr.msk.f32.gmra.mrb[82].mxu1 %vm1365_vm1, %v4913_v11  ;;  %4027 = vmatmul.mubr.msk.f32.gmra.mrb[82].mxu0 %vm1365_vm1, %v4913_v11 }
 0x2b3   : > { %3925 = vmatprep.mubr.msk.f32.mxu1 %vm1365_vm1, %v4951_v16  ;;  %4029 = vmatprep.mubr.msk.f32.mxu0 %vm1365_vm1, %v4951_v16 }
 0x2b6   : > { %3926 = vmatmul.mubr.msk.f32.gmra.mrb[84].mxu1 %vm1365_vm1, %v4941_v46  ;;  %4030 = vmatmul.mubr.msk.f32.gmra.mrb[84].mxu0 %vm1365_vm1, %v4941_v46 }
 0x2b7   : > { %3928 = vmatprep.mubr.msk.f32.mxu1 %vm1365_vm1, %v4979_v60  ;;  %4032 = vmatprep.mubr.msk.f32.mxu0 %vm1365_vm1, %v4979_v60 }
 0x2ba   : > { %3929 = vmatmul.mubr.msk.f32.gmra.mrb[86].mxu1 %vm1365_vm1, %v4969_v29  ;;  %4033 = vmatmul.mubr.msk.f32.gmra.mrb[86].mxu0 %vm1365_vm1, %v4969_v29 }
 0x2bb   : > { %3931 = vmatprep.mubr.msk.f32.mxu1 %vm1365_vm1, %v5007_v40  ;;  %4035 = vmatprep.mubr.msk.f32.mxu0 %vm1365_vm1, %v5007_v40 }
 0x2be   : > { %3932 = vmatmul.mubr.msk.f32.gmra.mrb[88].mxu1 %vm1365_vm1, %v4997_v41  ;;  %4036 = vmatmul.mubr.msk.f32.gmra.mrb[88].mxu0 %vm1365_vm1, %v4997_v41 }
 0x2bf   : > { %3934 = vmatprep.mubr.msk.f32.mxu1 %vm1365_vm1, %v5035_v44  ;;  %4038 = vmatprep.mubr.msk.f32.mxu0 %vm1365_vm1, %v5035_v44 }
 0x2c2   : > { %3935 = vmatmul.mubr.msk.f32.gmra.mrb[90].mxu1 %vm1365_vm1, %v5025_v1  ;;  %4039 = vmatmul.mubr.msk.f32.gmra.mrb[90].mxu0 %vm1365_vm1, %v5025_v1 }
 0x2c3   : > { %3937 = vmatprep.mubr.msk.f32.mxu1 %vm1365_vm1, %v5063_v43  ;;  %4041 = vmatprep.mubr.msk.f32.mxu0 %vm1365_vm1, %v5063_v43 }
 0x2c6   : > { %3938 = vmatmul.mubr.msk.f32.gmra.mrb[92].mxu1 %vm1365_vm1, %v5053_v47  ;;  %4042 = vmatmul.mubr.msk.f32.gmra.mrb[92].mxu0 %vm1365_vm1, %v5053_v47 }
 0x2c7   : > { %3940 = vmatprep.mubr.msk.f32.mxu1 %vm1365_vm1, %v5091_v2  ;;  %4044 = vmatprep.mubr.msk.f32.mxu0 %vm1365_vm1, %v5091_v2 }
 0x2ca   : > { %3941 = vmatmul.mubr.msk.f32.gmra.mrb[94].mxu1 %vm1365_vm1, %v5081_v58  ;;  %4045 = vmatmul.mubr.msk.f32.gmra.mrb[94].mxu0 %vm1365_vm1, %v5081_v58 }
 0x2cb   : > { %3943 = vmatprep.mubr.msk.f32.mxu1 %vm1365_vm1, %v5119_v42  ;;  %4047 = vmatprep.mubr.msk.f32.mxu0 %vm1365_vm1, %v5119_v42 }
 0x2ce   : > { %3944 = vmatmul.mubr.msk.f32.gmra.mrb[96].mxu1 %vm1365_vm1, %v5109_v59  ;;  %4048 = vmatmul.mubr.msk.f32.gmra.mrb[96].mxu0 %vm1365_vm1, %v5109_v59 }
 0x2cf   : > { %3946 = vmatprep.mubr.msk.f32.mxu1 %vm1365_vm1, %v5147_v3  ;;  %4050 = vmatprep.mubr.msk.f32.mxu0 %vm1365_vm1, %v5147_v3 }
 0x2d2   : > { %3947 = vmatmul.mubr.msk.f32.gmra.mrb[98].mxu1 %vm1365_vm1, %v5137_v23  ;;  %4051 = vmatmul.mubr.msk.f32.gmra.mrb[98].mxu0 %vm1365_vm1, %v5137_v23 }
 0x2d3   : > { %3949 = vmatprep.mubr.msk.f32.mxu1 %vm1365_vm1, %v5175_v9  ;;  %4053 = vmatprep.mubr.msk.f32.mxu0 %vm1365_vm1, %v5175_v9 }
 0x2d6   : > { %3950 = vmatmul.mubr.msk.f32.gmra.mrb[100].mxu1 %vm1365_vm1, %v5165_v48  ;;  %4054 = vmatmul.mubr.msk.f32.gmra.mrb[100].mxu0 %vm1365_vm1, %v5165_v48 }
 0x2d7   : > { %3952 = vmatprep.mubr.msk.f32.mxu1 %vm1365_vm1, %v5203_v13  ;;  %4056 = vmatprep.mubr.msk.f32.mxu0 %vm1365_vm1, %v5203_v13 }
 0x2da   : > { %3953 = vmatmul.mubr.msk.f32.gmra.mrb[102].mxu1 %vm1365_vm1, %v5193_v15  ;;  %4057 = vmatmul.mubr.msk.f32.gmra.mrb[102].mxu0 %vm1365_vm1, %v5193_v15 }
 0x2db   : > { %3955 = vmatprep.mubr.msk.f32.mxu1 %vm1365_vm1, %v5231_v21  ;;  %4059 = vmatprep.mubr.msk.f32.mxu0 %vm1365_vm1, %v5231_v21 }
 0x2de   : > { %3956 = vmatmul.mubr.msk.f32.gmra.mrb[104].mxu1 %vm1365_vm1, %v5221_v19  ;;  %4060 = vmatmul.mubr.msk.f32.gmra.mrb[104].mxu0 %vm1365_vm1, %v5221_v19 }
 0x2df   : > { %3958 = vmatprep.mubr.msk.f32.mxu1 %vm1365_vm1, %v5259_v27  ;;  %4062 = vmatprep.mubr.msk.f32.mxu0 %vm1365_vm1, %v5259_v27 }
 0x2e2   : > { %3959 = vmatmul.mubr.msk.f32.gmra.mrb[106].mxu1 %vm1365_vm1, %v5249_v25  ;;  %4063 = vmatmul.mubr.msk.f32.gmra.mrb[106].mxu0 %vm1365_vm1, %v5249_v25 }
 0x2e3   : > { %3961 = vmatprep.mubr.msk.f32.mxu1 %vm1365_vm1, %v5287_v33  ;;  %4065 = vmatprep.mubr.msk.f32.mxu0 %vm1365_vm1, %v5287_v33 }
 0x2e6   : > { %3962 = vmatmul.mubr.msk.f32.gmra.mrb[108].mxu1 %vm1365_vm1, %v5277_v31  ;;  %4066 = vmatmul.mubr.msk.f32.gmra.mrb[108].mxu0 %vm1365_vm1, %v5277_v31 }
 0x2e7   : > { %3964 = vmatprep.mubr.msk.f32.mxu1 %vm1365_vm1, %v5315_v39  ;;  %4068 = vmatprep.mubr.msk.f32.mxu0 %vm1365_vm1, %v5315_v39 }
 0x2ea   : > { %4069 = vmatmul.mubr.msk.f32.gmra.mrb[110].mxu0 %vm1365_vm1, %v5305_v37  ;;  %3965 = vmatmul.mubr.msk.f32.gmra.mrb[110].mxu1 %vm1365_vm1, %v5305_v37 }
 0x341   : > { %v3873_v27 = vpop.f32.mrb[48].mxu1  ;;  %v3977_v33 = vpop.f32.mrb[48].mxu0 }
 0x342   : > { %2466 = vrot.lane.b32.xlu1 %v3873_v27, %s4341_s7  ;;  %2722 = vrot.lane.b32.xlu0 %v3977_v33, %s4342_s8  ;;  %v1692_v31 = vpop.f32.mrb[49].mxu1  ;;  %v2081_v25 = vpop.f32.mrb[49].mxu0 }
 0x345   : > { %v3876_v21 = vpop.f32.mrb[50].mxu1  ;;  %v3980_v19 = vpop.f32.mrb[50].mxu0 }
 0x346   : > { %2464 = vrot.lane.b32.xlu0 %v1692_v31, %s4341_s7  ;;  %2720 = vrot.lane.b32.xlu1 %v2081_v25, %s4342_s8  ;;  %v1702_v39 = vpop.f32.mrb[51].mxu1  ;;  %v2091_v13 = vpop.f32.mrb[51].mxu0 }
 0x349   : > { %v3879_v15 = vpop.f32.mrb[52].mxu1  ;;  %v3983_v37 = vpop.f32.mrb[52].mxu0 }
 0x34a   : > { %2470 = vrot.lane.b32.xlu1 %v3876_v21, %s4341_s7  ;;  %2726 = vrot.lane.b32.xlu0 %v3980_v19, %s4342_s8  ;;  %v1712_v27 = vpop.f32.mrb[53].mxu1  ;;  %v2101_v9 = vpop.f32.mrb[53].mxu0 }
 0x34d   : > { %v3882_v48 = vpop.f32.mrb[54].mxu1  ;;  %v3986_v33 = vpop.f32.mrb[54].mxu0 }
 0x34e   : > { %2468 = vrot.lane.b32.xlu1 %v1702_v39, %s4341_s7  ;;  %2474 = vrot.lane.b32.xlu0 %v3879_v15, %s4341_s7  ;;  %v1722_v3 = vpop.f32.mrb[55].mxu1  ;;  %v2111_v31 = vpop.f32.mrb[55].mxu0 }
 0x351   : > { %v3885_v23 = vpop.f32.mrb[56].mxu1  ;;  %v3989_v25 = vpop.f32.mrb[56].mxu0 }
 0x352   : > { %2724 = vrot.lane.b32.xlu1 %v2091_v13, %s4342_s8  ;;  %2730 = vrot.lane.b32.xlu0 %v3983_v37, %s4342_s8  ;;  %v1732_v42 = vpop.f32.mrb[57].mxu1  ;;  %v2121_v21 = vpop.f32.mrb[57].mxu0 }
 0x355   : > { %v3888_v59 = vpop.f32.mrb[58].mxu1  ;;  %v3992_v19 = vpop.f32.mrb[58].mxu0 }
 0x356   : > { %2472 = vrot.lane.b32.xlu1 %v1712_v27, %s4341_s7  ;;  %2478 = vrot.lane.b32.xlu0 %v3882_v48, %s4341_s7  ;;  %v1742_v2 = vpop.f32.mrb[59].mxu1  ;;  %v2131_v39 = vpop.f32.mrb[59].mxu0 }
 0x359   : > { %v3891_v58 = vpop.f32.mrb[60].mxu1  ;;  %v3995_v15 = vpop.f32.mrb[60].mxu0 }
 0x35a   : > { %2728 = vrot.lane.b32.xlu1 %v2101_v9, %s4342_s8  ;;  %2734 = vrot.lane.b32.xlu0 %v3986_v33, %s4342_s8  ;;  %v1752_v43 = vpop.f32.mrb[61].mxu1  ;;  %v2141_v13 = vpop.f32.mrb[61].mxu0 }
 0x35d   : > { %v3894_v47 = vpop.f32.mrb[62].mxu1  ;;  %v3998_v37 = vpop.f32.mrb[62].mxu0 }
 0x35e   : > { %2476 = vrot.lane.b32.xlu1 %v1722_v3, %s4341_s7  ;;  %2482 = vrot.lane.b32.xlu0 %v3885_v23, %s4341_s7  ;;  %v1762_v44 = vpop.f32.mrb[63].mxu1  ;;  %v2151_v27 = vpop.f32.mrb[63].mxu0 }
 0x361   : > { %v3897_v1 = vpop.f32.mrb[64].mxu1  ;;  %v4001_v48 = vpop.f32.mrb[64].mxu0 }
 0x362   : > { %2732 = vrot.lane.b32.xlu1 %v2111_v31, %s4342_s8  ;;  %2738 = vrot.lane.b32.xlu0 %v3989_v25, %s4342_s8  ;;  %v1772_v40 = vpop.f32.mrb[65].mxu1  ;;  %v2161_v9 = vpop.f32.mrb[65].mxu0 }
 0x365   : > { %v3900_v41 = vpop.f32.mrb[66].mxu1  ;;  %v4004_v33 = vpop.f32.mrb[66].mxu0 }
 0x366   : > { %2480 = vrot.lane.b32.xlu1 %v1732_v42, %s4341_s7  ;;  %2486 = vrot.lane.b32.xlu0 %v3888_v59, %s4341_s7  ;;  %v1782_v60 = vpop.f32.mrb[67].mxu1  ;;  %v2171_v3 = vpop.f32.mrb[67].mxu0 }
 0x369   : > { %v3903_v29 = vpop.f32.mrb[68].mxu1  ;;  %v4007_v23 = vpop.f32.mrb[68].mxu0 }
 0x36a   : > { %2736 = vrot.lane.b32.xlu1 %v2121_v21, %s4342_s8  ;;  %2742 = vrot.lane.b32.xlu0 %v3992_v19, %s4342_s8  ;;  %v5481_v16 = vpop.f32.mrb[69].mxu1  ;;  %v5483_v31 = vpop.f32.mrb[69].mxu0 }
 0x36d   : > { %v3906_v25 = vpop.f32.mrb[70].mxu1  ;;  %v5485_v46 = vpop.f32.mrb[70].mxu0 }
 0x36e   : > { %2484 = vrot.lane.b32.xlu1 %v1742_v2, %s4341_s7  ;;  %2490 = vrot.lane.b32.xlu0 %v3891_v58, %s4341_s7  ;;  %v5489_v59 = vpop.f32.mrb[71].mxu1  ;;  %v5491_v42 = vpop.f32.mrb[71].mxu0 }
 0x371   : > { %v5493_v57 = vpop.f32.mrb[72].mxu1  ;;  %v5495_v21 = vpop.f32.mrb[72].mxu0 }
 0x372   : > { %2740 = vrot.lane.b32.xlu1 %v2131_v39, %s4342_s8  ;;  %2746 = vrot.lane.b32.xlu0 %v3995_v15, %s4342_s8  ;;  %v5499_v19 = vpop.f32.mrb[73].mxu1  ;;  %v5501_v11 = vpop.f32.mrb[73].mxu0 }
 0x375   : > { %v5503_v22 = vpop.f32.mrb[74].mxu1  ;;  %v5505_v2 = vpop.f32.mrb[74].mxu0 }
 0x376   : > { %2488 = vrot.lane.b32.xlu1 %v1752_v43, %s4341_s7  ;;  %2494 = vrot.lane.b32.xlu0 %v3894_v47, %s4341_s7  ;;  %v5509_v58 = vpop.f32.mrb[75].mxu1  ;;  %v5511_v50 = vpop.f32.mrb[75].mxu0 }
 0x379   : > { %v5513_v38 = vpop.f32.mrb[76].mxu1  ;;  %v5515_v39 = vpop.f32.mrb[76].mxu0 }
 0x37a   : > { %2744 = vrot.lane.b32.xlu1 %v2141_v13, %s4342_s8  ;;  %2750 = vrot.lane.b32.xlu0 %v3998_v37, %s4342_s8  ;;  %v5519_v15 = vpop.f32.mrb[77].mxu1  ;;  %v5521_v36 = vpop.f32.mrb[77].mxu0 }
 0x37d   : > { %v5523_v32 = vpop.f32.mrb[78].mxu1  ;;  %v5525_v43 = vpop.f32.mrb[78].mxu0 }
 0x37e   : > { %2492 = vrot.lane.b32.xlu1 %v1762_v44, %s4341_s7  ;;  %2498 = vrot.lane.b32.xlu0 %v3897_v1, %s4341_s7  ;;  %v5529_v47 = vpop.f32.mrb[79].mxu1  ;;  %v5531_v30 = vpop.f32.mrb[79].mxu0 }
 0x381   : > { %v5533_v26 = vpop.f32.mrb[80].mxu1  ;;  %v5535_v13 = vpop.f32.mrb[80].mxu0 }
 0x382   : > { %2748 = vrot.lane.b32.xlu1 %v2151_v27, %s4342_s8  ;;  %2754 = vrot.lane.b32.xlu0 %v4001_v48, %s4342_s8  ;;  %v5539_v37 = vpop.f32.mrb[81].mxu1  ;;  %v5541_v24 = vpop.f32.mrb[81].mxu0 }
 0x385   : > { %v5543_v20 = vpop.f32.mrb[82].mxu1  ;;  %v5545_v44 = vpop.f32.mrb[82].mxu0 }
 0x386   : > { %2496 = vrot.lane.b32.xlu1 %v1772_v40, %s4341_s7  ;;  %2502 = vrot.lane.b32.xlu0 %v3900_v41, %s4341_s7  ;;  %v5549_v1 = vpop.f32.mrb[83].mxu1  ;;  %v5551_v18 = vpop.f32.mrb[83].mxu0 }
 0x389   : > { %v5553_v12 = vpop.f32.mrb[84].mxu1  ;;  %v5555_v27 = vpop.f32.mrb[84].mxu0 }
 0x38a   : > { %2752 = vrot.lane.b32.xlu1 %v2161_v9, %s4342_s8  ;;  %2758 = vrot.lane.b32.xlu0 %v4004_v33, %s4342_s8  ;;  %v5559_v48 = vpop.f32.mrb[85].mxu1  ;;  %v5561_v14 = vpop.f32.mrb[85].mxu0 }
 0x38d   : > { %v5563_v8 = vpop.f32.mrb[86].mxu1  ;;  %v5565_v40 = vpop.f32.mrb[86].mxu0 }
 0x38e   : > { %2500 = vrot.lane.b32.xlu1 %v1782_v60, %s4341_s7  ;;  %2506 = vrot.lane.b32.xlu0 %v3903_v29, %s4341_s7  ;;  %v5569_v41 = vpop.f32.mrb[87].mxu1  ;;  %v5571_v45 = vpop.f32.mrb[87].mxu0 }
 0x391   : > { %v5573_v62 = vpop.f32.mrb[88].mxu1  ;;  %v5575_v9 = vpop.f32.mrb[88].mxu0 }
 0x392   : > { %2756 = vrot.lane.b32.xlu1 %v2171_v3, %s4342_s8  ;;  %2762 = vrot.lane.b32.xlu0 %v4007_v23, %s4342_s8  ;;  %v5579_v33 = vpop.f32.mrb[89].mxu1  ;;  %v5581_v4 = vpop.f32.mrb[89].mxu0 }
 0x395   : > { %v5583_v7 = vpop.f32.mrb[90].mxu1  ;;  %v5585_v60 = vpop.f32.mrb[90].mxu0 }
 0x396   : > { %2504 = vrot.lane.b32.xlu1 %v5481_v16, %s4341_s7  ;;  %2510 = vrot.lane.b32.xlu0 %v3906_v25, %s4341_s7  ;;  %v5590_v29 = vpop.f32.mrb[91].mxu1  ;;  %v5592_v6 = vpop.f32.mrb[91].mxu0 }
 0x397   : > { %6332 = vst [vmem:[#allocation52_spill] sm:$0xff] %v5592_v6 }
 0x399   : > { %v5594_v3 = vpop.f32.mrb[92].mxu1  ;;  %v5596_v23 = vpop.f32.mrb[92].mxu0 }
 0x39a   : > { %6333 = vst [vmem:[#allocation53_spill] sm:$0xff] %v5596_v23  ;;  %2760 = vrot.lane.b32.xlu1 %v5483_v31, %s4342_s8  ;;  %2766 = vrot.lane.b32.xlu0 %v5485_v46, %s4342_s8  ;;  %v5602_v61 = vpop.f32.mrb[93].mxu0  ;;  %v5604_v54 = vpop.f32.mrb[93].mxu1 }
 0x39b   : > { %6334 = vst [vmem:[#allocation54_spill] sm:$0xff] %v5602_v61 }
 0x39d   : > { %v5606_v16 = vpop.f32.mrb[94].mxu1  ;;  %v5608_v25 = vpop.f32.mrb[94].mxu0 }
 0x39e   : > { %6335 = vst [vmem:[#allocation55_spill] sm:$0xff] %v5608_v25  ;;  %2508 = vrot.lane.b32.xlu1 %v5489_v59, %s4341_s7  ;;  %2514 = vrot.lane.b32.xlu0 %v5493_v57, %s4341_s7  ;;  %v5614_v23 = vpop.f32.mrb[95].mxu0  ;;  %v5616_v31 = vpop.f32.mrb[95].mxu1 }
 0x39f   : > { %6336 = vst [vmem:[#allocation56_spill] sm:$0xff] %v5614_v23 }
 0x3a1   : > { %v5618_v6 = vpop.f32.mrb[96].mxu1  ;;  %v5620_v46 = vpop.f32.mrb[96].mxu0 }
 0x3a2   : > { %6337 = vst [vmem:[#allocation57_spill] sm:$0xff] %v5620_v46  ;;  %2764 = vrot.lane.b32.xlu1 %v5491_v42, %s4342_s8  ;;  %2770 = vrot.lane.b32.xlu0 %v5495_v21, %s4342_s8  ;;  %v5626_v25 = vpop.f32.mrb[97].mxu0  ;;  %v5628_v59 = vpop.f32.mrb[97].mxu1 }
 0x3a5   : > { %v5630_v61 = vpop.f32.mrb[98].mxu1  ;;  %v5632_v57 = vpop.f32.mrb[98].mxu0 }
 0x3a6   : > { %6338 = vst [vmem:[#allocation58_spill] sm:$0xff] %v5632_v57  ;;  %2512 = vrot.lane.b32.xlu1 %v5499_v19, %s4341_s7  ;;  %2518 = vrot.lane.b32.xlu0 %v5503_v22, %s4341_s7  ;;  %v5638_v46 = vpop.f32.mrb[99].mxu0  ;;  %v5640_v42 = vpop.f32.mrb[99].mxu1 }
 0x3a7   : > { %6339 = vst [vmem:[#allocation59_spill] sm:$0xff] %v5638_v46 }
 0x3a9   : > { %v5642_v23 = vpop.f32.mrb[100].mxu1  ;;  %v5644_v21 = vpop.f32.mrb[100].mxu0 }
 0x3aa   : > { %6340 = vst [vmem:[#allocation60_spill] sm:$0xff] %v5642_v23  ;;  %6341 = vst [vmem:[#allocation61_spill] sm:$0xff] %v5644_v21  ;;  %2768 = vrot.lane.b32.xlu1 %v5501_v11, %s4342_s8  ;;  %2774 = vrot.lane.b32.xlu0 %v5505_v2, %s4342_s8  ;;  %v5650_v57 = vpop.f32.mrb[101].mxu0  ;;  %v5652_v19 = vpop.f32.mrb[101].mxu1 }
 0x3ab   : > { %6342 = vst [vmem:[#allocation62_spill] sm:$0xff] %v5650_v57 }
 0x3ad   : > { %v5654_v22 = vpop.f32.mrb[102].mxu1  ;;  %v5656_v46 = vpop.f32.mrb[102].mxu0 }
 0x3ae   : > { %6343 = vst [vmem:[#allocation63_spill] sm:$0xff] %v5656_v46  ;;  %2516 = vrot.lane.b32.xlu1 %v5509_v58, %s4341_s7  ;;  %2522 = vrot.lane.b32.xlu0 %v5513_v38, %s4341_s7  ;;  %v5662_v21 = vpop.f32.mrb[103].mxu0  ;;  %v5664_v11 = vpop.f32.mrb[103].mxu1 }
 0x3af   : > { %6344 = vst [vmem:[#allocation64_spill] sm:$0xff] %v5662_v21 }
 0x3b1   : > { %v5666_v2 = vpop.f32.mrb[104].mxu1  ;;  %v5668_v23 = vpop.f32.mrb[104].mxu0 }
 0x3b2   : > { %6345 = vst [vmem:[#allocation65_spill] sm:$0xff] %v5668_v23  ;;  %2772 = vrot.lane.b32.xlu1 %v5511_v50, %s4342_s8  ;;  %2778 = vrot.lane.b32.xlu0 %v5515_v39, %s4342_s8  ;;  %v5674_v46 = vpop.f32.mrb[105].mxu0  ;;  %v5676_v58 = vpop.f32.mrb[105].mxu1 }
 0x3b3   : > { %6346 = vst [vmem:[#allocation66_spill] sm:$0xff] %v5674_v46  ;;  %6347 = vst [vmem:[#allocation67_spill] sm:$0xff] %v5676_v58 }
 0x3b4   : > { %v2467_v57 = vpop.permute.xlu1 %2466  ;;  %v2723_v38 = vpop.permute.xlu0 %2722 }
 0x3b5   : > { %v2913_v23 = vsel %vm1365_vm1, %v4883_v49, %v2467_v57  ;;  %v5686_v50 = vpop.f32.mrb[106].mxu1  ;;  %v5688_v21 = vpop.f32.mrb[106].mxu0 }
 0x3b6   : > { %6348 = vst [vmem:[#allocation68_spill] sm:$0xff] %v5686_v50  ;;  %6349 = vst [vmem:[#allocation69_spill] sm:$0xff] %v5688_v21  ;;  %v2977_v39 = vsel %vm787_vm0, %v2913_v23, %v2723_v38  ;;  %2520 = vrot.lane.b32.xlu1 %v5519_v15, %s4341_s7  ;;  %2526 = vrot.lane.b32.xlu0 %v5523_v32, %s4341_s7  ;;  %v5695_v46 = vpop.f32.mrb[107].mxu0  ;;  %v5697_v58 = vpop.f32.mrb[107].mxu1 }
 0x3b7   : > { %3042 = vst.msk [vmem:[%s5682_s11 + $0x8] sm:$0xff] %vm3040_vm2, %v2977_v39 }
 0x3b8   : > { %v2465_v49 = vpop.permute.xlu0 %2464  ;;  %v2721_v57 = vpop.permute.xlu1 %2720 }
 0x3b9   : > { %v2912_v21 = vsel %vm1365_vm1, %v4890_v17, %v2465_v49  ;;  %v5703_v50 = vpop.f32.mrb[108].mxu1  ;;  %v5705_v23 = vpop.f32.mrb[108].mxu0 }
 0x3ba   : > { %6350 = vst [vmem:[#allocation70_spill] sm:$0xff] %v5705_v23  ;;  %v2976_v15 = vsel %vm787_vm0, %v2912_v21, %v2721_v57  ;;  %2776 = vrot.lane.b32.xlu1 %v5521_v36, %s4342_s8  ;;  %2782 = vrot.lane.b32.xlu0 %v5525_v43, %s4342_s8  ;;  %v5712_v32 = vpop.f32.mrb[109].mxu0  ;;  %v5714_v38 = vpop.f32.mrb[109].mxu1 }
 0x3bb   : > { %3041 = vst.msk [vmem:[%s5682_s11] sm:$0xff] %vm3040_vm2, %v2976_v15 }
 0x3bc   : > { %v2471_v17 = vpop.permute.xlu1 %2470  ;;  %v2727_v39 = vpop.permute.xlu0 %2726 }
 0x3bd   : > { %v2915_v49 = vsel %vm1365_vm1, %v4911_v5, %v2471_v17  ;;  %v5720_v23 = vpop.f32.mrb[110].mxu1  ;;  %v5722_v21 = vpop.f32.mrb[110].mxu0 }
 0x3be   : > { %v2979_v36 = vsel %vm787_vm0, %v2915_v49, %v2727_v39  ;;  %2524 = vrot.lane.b32.xlu1 %v5529_v47, %s4341_s7  ;;  %2530 = vrot.lane.b32.xlu0 %v5533_v26, %s4341_s7  ;;  %v5729_v43 = vpop.f32.mrb[111].mxu0  ;;  %v5731_v57 = vpop.f32.mrb[111].mxu1 }
 0x3bf   : > { %3044 = vst.msk [vmem:[%s5682_s11 + $0x18] sm:$0xff] %vm3040_vm2, %v2979_v36 }
 0x3c0   : > { %v2469_v5 = vpop.permute.xlu1 %2468  ;;  %v2475_v15 = vpop.permute.xlu0 %2474 }
 0x3c1   : > { %v2914_v47 = vsel %vm1365_vm1, %v4918_v51, %v2469_v5  ;;  %v2917_v26 = vsel %vm1365_vm1, %v4939_v35, %v2475_v15 }
 0x3c2   : > { %2780 = vrot.lane.b32.xlu1 %v5531_v30, %s4342_s8  ;;  %2786 = vrot.lane.b32.xlu0 %v5535_v13, %s4342_s8 }
 0x3c4   : > { %v2725_v17 = vpop.permute.xlu1 %2724  ;;  %v2731_v39 = vpop.permute.xlu0 %2730 }
 0x3c5   : > { %v2978_v49 = vsel %vm787_vm0, %v2914_v47, %v2725_v17  ;;  %v2981_v36 = vsel %vm787_vm0, %v2917_v26, %v2731_v39 }
 0x3c6   : > { %3043 = vst.msk [vmem:[%s5682_s11 + $0x10] sm:$0xff] %vm3040_vm2, %v2978_v49  ;;  %3046 = vst.msk [vmem:[%s5682_s11 + $0x28] sm:$0xff] %vm3040_vm2, %v2981_v36  ;;  %2528 = vrot.lane.b32.xlu1 %v5539_v37, %s4341_s7  ;;  %2534 = vrot.lane.b32.xlu0 %v5543_v20, %s4341_s7 }
 0x3c8   : > { %v2473_v51 = vpop.permute.xlu1 %2472  ;;  %v2479_v35 = vpop.permute.xlu0 %2478 }
 0x3c9   : > { %v2916_v30 = vsel %vm1365_vm1, %v4946_v63, %v2473_v51  ;;  %v2919_v13 = vsel %vm1365_vm1, %v4967_v28, %v2479_v35 }
 0x3ca   : > { %2784 = vrot.lane.b32.xlu1 %v5541_v24, %s4342_s8  ;;  %2790 = vrot.lane.b32.xlu0 %v5545_v44, %s4342_s8 }
 0x3cc   : > { %v2729_v5 = vpop.permute.xlu1 %2728  ;;  %v2735_v15 = vpop.permute.xlu0 %2734 }
 0x3cd   : > { %v2980_v37 = vsel %vm787_vm0, %v2916_v30, %v2729_v5  ;;  %v2983_v20 = vsel %vm787_vm0, %v2919_v13, %v2735_v15  ;;  %v6353_v13 = vld [vmem:[#allocation53_spill] sm:$0xff]  ;;  %v6354_v5 = vld [vmem:[#allocation18_spill] sm:$0xff] }
 0x3ce   : > { %3045 = vst.msk [vmem:[%s5682_s11 + $0x20] sm:$0xff] %vm3040_vm2, %v2980_v37  ;;  %3048 = vst.msk [vmem:[%s5682_s11 + $0x38] sm:$0xff] %vm3040_vm2, %v2983_v20  ;;  %2532 = vrot.lane.b32.xlu1 %v5549_v1, %s4341_s7  ;;  %2538 = vrot.lane.b32.xlu0 %v5553_v12, %s4341_s7  ;;  %v6355_v37 = vld [vmem:[#allocation20_spill] sm:$0xff] }
 0x3d0   : > { %v2477_v63 = vpop.permute.xlu1 %2476  ;;  %v2483_v28 = vpop.permute.xlu0 %2482 }
 0x3d1   : > { %v2918_v24 = vsel %vm1365_vm1, %v4974_v10, %v2477_v63  ;;  %v2921_v44 = vsel %vm1365_vm1, %v4995_v34, %v2483_v28 }
 0x3d2   : > { %2788 = vrot.lane.b32.xlu1 %v5551_v18, %s4342_s8  ;;  %2794 = vrot.lane.b32.xlu0 %v5555_v27, %s4342_s8 }
 0x3d4   : > { %v2733_v47 = vpop.permute.xlu1 %2732  ;;  %v2739_v26 = vpop.permute.xlu0 %2738 }
 0x3d5   : > { %v2982_v1 = vsel %vm787_vm0, %v2918_v24, %v2733_v47  ;;  %v2985_v12 = vsel %vm787_vm0, %v2921_v44, %v2739_v26  ;;  %v6356_v47 = vld [vmem:[#allocation54_spill] sm:$0xff]  ;;  %v6357_v26 = vld [vmem:[#allocation55_spill] sm:$0xff] }
 0x3d6   : > { %3047 = vst.msk [vmem:[%s5682_s11 + $0x30] sm:$0xff] %vm3040_vm2, %v2982_v1  ;;  %3050 = vst.msk [vmem:[%s5682_s11 + $0x48] sm:$0xff] %vm3040_vm2, %v2985_v12  ;;  %2536 = vrot.lane.b32.xlu1 %v5559_v48, %s4341_s7  ;;  %2542 = vrot.lane.b32.xlu0 %v5563_v8, %s4341_s7  ;;  %v6358_v1 = vld [vmem:[#allocation22_spill] sm:$0xff] }
 0x3d8   : > { %v2481_v10 = vpop.permute.xlu1 %2480  ;;  %v2487_v34 = vpop.permute.xlu0 %2486 }
 0x3d9   : > { %v2920_v18 = vsel %vm1365_vm1, %v5002_v56, %v2481_v10  ;;  %v2923_v27 = vsel %vm1365_vm1, %v5023_v0, %v2487_v34  ;;  %v6359_v10 = vld [vmem:[#allocation24_spill] sm:$0xff] }
 0x3da   : > { %2792 = vrot.lane.b32.xlu1 %v5561_v14, %s4342_s8  ;;  %2798 = vrot.lane.b32.xlu0 %v5565_v40, %s4342_s8 }
 0x3dc   : > { %v2737_v17 = vpop.permute.xlu1 %2736  ;;  %v2743_v39 = vpop.permute.xlu0 %2742 }
 0x3dd   : > { %v2984_v48 = vsel %vm787_vm0, %v2920_v18, %v2737_v17  ;;  %v2987_v8 = vsel %vm787_vm0, %v2923_v27, %v2743_v39 }
 0x3de   : > { %3049 = vst.msk [vmem:[%s5682_s11 + $0x40] sm:$0xff] %vm3040_vm2, %v2984_v48  ;;  %3052 = vst.msk [vmem:[%s5682_s11 + $0x58] sm:$0xff] %vm3040_vm2, %v2987_v8  ;;  %2540 = vrot.lane.b32.xlu1 %v5569_v41, %s4341_s7  ;;  %2546 = vrot.lane.b32.xlu0 %v5573_v62, %s4341_s7  ;;  %v6360_v48 = vld [vmem:[#allocation56_spill] sm:$0xff]  ;;  %v6361_v8 = vld [vmem:[#allocation57_spill] sm:$0xff] }
 0x3e0   : > { %v2485_v56 = vpop.permute.xlu1 %2484  ;;  %v2491_v0 = vpop.permute.xlu0 %2490 }
 0x3e1   : > { %v2922_v14 = vsel %vm1365_vm1, %v5030_v55, %v2485_v56  ;;  %v2925_v40 = vsel %vm1365_vm1, %v5051_v52, %v2491_v0  ;;  %v6362_v56 = vld [vmem:[#allocation26_spill] sm:$0xff] }
 0x3e2   : > { %2796 = vrot.lane.b32.xlu1 %v5571_v45, %s4342_s8  ;;  %2802 = vrot.lane.b32.xlu0 %v5575_v9, %s4342_s8  ;;  %v6351_v9 = vld [vmem:[#allocation16_spill] sm:$0xff] }
 0x3e4   : > { %v2741_v49 = vpop.permute.xlu1 %2740  ;;  %v2747_v36 = vpop.permute.xlu0 %2746 }
 0x3e5   : > { %v2986_v41 = vsel %vm787_vm0, %v2922_v14, %v2741_v49  ;;  %v2989_v62 = vsel %vm787_vm0, %v2925_v40, %v2747_v36  ;;  %v6363_v14 = vld [vmem:[#allocation28_spill] sm:$0xff] }
 0x3e6   : > { %3051 = vst.msk [vmem:[%s5682_s11 + $0x50] sm:$0xff] %vm3040_vm2, %v2986_v41  ;;  %3054 = vst.msk [vmem:[%s5682_s11 + $0x68] sm:$0xff] %vm3040_vm2, %v2989_v62  ;;  %2544 = vrot.lane.b32.xlu1 %v5579_v33, %s4341_s7  ;;  %2550 = vrot.lane.b32.xlu0 %v5583_v7, %s4341_s7 }
 0x3e8   : > { %v2489_v55 = vpop.permute.xlu1 %2488  ;;  %v2495_v52 = vpop.permute.xlu0 %2494 }
 0x3e9   : > { %v2924_v45 = vsel %vm1365_vm1, %v5058_v53, %v2489_v55  ;;  %v2927_v51 = vsel %vm1365_vm1, %v6351_v9, %v2495_v52  ;;  %v6364_v55 = vld [vmem:[#allocation58_spill] sm:$0xff]  ;;  %v6366_v9 = vld [vmem:[#allocation32_spill] sm:$0xff] }
 0x3ea   : > { %2800 = vrot.lane.b32.xlu1 %v5581_v4, %s4342_s8  ;;  %2806 = vrot.lane.b32.xlu0 %v5585_v60, %s4342_s8  ;;  %v6352_v60 = vld [vmem:[#allocation52_spill] sm:$0xff]  ;;  %v6365_v52 = vld [vmem:[#allocation30_spill] sm:$0xff] }
 0x3ec   : > { %v2745_v35 = vpop.permute.xlu1 %2744  ;;  %v2751_v30 = vpop.permute.xlu0 %2750 }
 0x3ed   : > { %v2988_v33 = vsel %vm787_vm0, %v2924_v45, %v2745_v35  ;;  %v2991_v7 = vsel %vm787_vm0, %v2927_v51, %v2751_v30 }
 0x3ee   : > { %3053 = vst.msk [vmem:[%s5682_s11 + $0x60] sm:$0xff] %vm3040_vm2, %v2988_v33  ;;  %3056 = vst.msk [vmem:[%s5682_s11 + $0x78] sm:$0xff] %vm3040_vm2, %v2991_v7  ;;  %2548 = vrot.lane.b32.xlu1 %v5590_v29, %s4341_s7  ;;  %2554 = vrot.lane.b32.xlu0 %v5594_v3, %s4341_s7 }
 0x3f0   : > { %v2493_v53 = vpop.permute.xlu1 %2492  ;;  %v2499_v4 = vpop.permute.xlu0 %2498 }
 0x3f1   : > { %v2926_v15 = vsel %vm1365_vm1, %v6354_v5, %v2493_v53  ;;  %v2929_v20 = vsel %vm1365_vm1, %v6355_v37, %v2499_v4  ;;  %v6368_v53 = vld [vmem:[#allocation59_spill] sm:$0xff]  ;;  %v6369_v4 = vld [vmem:[#allocation61_spill] sm:$0xff]  ;;  %v6371_v5 = vld [vmem:[#allocation36_spill] sm:$0xff] }
 0x3f2   : > { %2804 = vrot.lane.b32.xlu1 %v6352_v60, %s4342_s8  ;;  %2810 = vrot.lane.b32.xlu0 %v6353_v13, %s4342_s8  ;;  %v6370_v60 = vld [vmem:[#allocation34_spill] sm:$0xff] }
 0x3f4   : > { %v2749_v63 = vpop.permute.xlu1 %2748  ;;  %v2755_v28 = vpop.permute.xlu0 %2754 }
 0x3f5   : > { %v2990_v29 = vsel %vm787_vm0, %v2926_v15, %v2749_v63  ;;  %v2993_v3 = vsel %vm787_vm0, %v2929_v20, %v2755_v28 }
 0x3f6   : > { %3055 = vst.msk [vmem:[%s5682_s11 + $0x70] sm:$0xff] %vm3040_vm2, %v2990_v29  ;;  %3058 = vst.msk [vmem:[%s5682_s11 + $0x88] sm:$0xff] %vm3040_vm2, %v2993_v3  ;;  %2552 = vrot.lane.b32.xlu1 %v5604_v54, %s4341_s7  ;;  %2558 = vrot.lane.b32.xlu0 %v5606_v16, %s4341_s7  ;;  %v6372_v3 = vld [vmem:[#allocation62_spill] sm:$0xff] }
 0x3f8   : > { %v2497_v24 = vpop.permute.xlu1 %2496  ;;  %v2503_v44 = vpop.permute.xlu0 %2502 }
 0x3f9   : > { %v2928_v12 = vsel %vm1365_vm1, %v6358_v1, %v2497_v24  ;;  %v2931_v34 = vsel %vm1365_vm1, %v6359_v10, %v2503_v44  ;;  %v6373_v24 = vld [vmem:[#allocation63_spill] sm:$0xff]  ;;  %v6374_v44 = vld [vmem:[#allocation38_spill] sm:$0xff] }
 0x3fa   : > { %2808 = vrot.lane.b32.xlu1 %v6356_v47, %s4342_s8  ;;  %2814 = vrot.lane.b32.xlu0 %v6357_v26, %s4342_s8  ;;  %v6375_v26 = vld [vmem:[#allocation40_spill] sm:$0xff] }
 0x3fc   : > { %v2753_v18 = vpop.permute.xlu1 %2752  ;;  %v2759_v27 = vpop.permute.xlu0 %2758 }
 0x3fd   : > { %v2992_v54 = vsel %vm787_vm0, %v2928_v12, %v2753_v18  ;;  %v2995_v16 = vsel %vm787_vm0, %v2931_v34, %v2759_v27  ;;  %v6376_v27 = vld [vmem:[#allocation64_spill] sm:$0xff] }
 0x3fe   : > { %3057 = vst.msk [vmem:[%s5682_s11 + $0x80] sm:$0xff] %vm3040_vm2, %v2992_v54  ;;  %3060 = vst.msk [vmem:[%s5682_s11 + $0x98] sm:$0xff] %vm3040_vm2, %v2995_v16  ;;  %2556 = vrot.lane.b32.xlu1 %v5616_v31, %s4341_s7  ;;  %2562 = vrot.lane.b32.xlu0 %v5618_v6, %s4341_s7  ;;  %v6377_v54 = vld [vmem:[#allocation65_spill] sm:$0xff]  ;;  %v6378_v16 = vld [vmem:[#allocation42_spill] sm:$0xff] }
 0x400   : > { %v2501_v17 = vpop.permute.xlu1 %2500  ;;  %v2507_v39 = vpop.permute.xlu0 %2506 }
 0x401   : > { %v2930_v0 = vsel %vm1365_vm1, %v6362_v56, %v2501_v17  ;;  %v2933_v40 = vsel %vm1365_vm1, %v6363_v14, %v2507_v39  ;;  %v6379_v39 = vld [vmem:[#allocation44_spill] sm:$0xff] }
 0x402   : > { %2812 = vrot.lane.b32.xlu1 %v6360_v48, %s4342_s8  ;;  %2818 = vrot.lane.b32.xlu0 %v6361_v8, %s4342_s8  ;;  %v6381_v14 = vld [vmem:[#allocation68_spill] sm:$0xff] }
 0x404   : > { %v2757_v49 = vpop.permute.xlu1 %2756  ;;  %v2763_v36 = vpop.permute.xlu0 %2762 }
 0x405   : > { %v2994_v31 = vsel %vm787_vm0, %v2930_v0, %v2757_v49  ;;  %v2997_v6 = vsel %vm787_vm0, %v2933_v40, %v2763_v36  ;;  %v6380_v0 = vld [vmem:[#allocation67_spill] sm:$0xff]  ;;  %v6382_v36 = vld [vmem:[#allocation66_spill] sm:$0xff] }
 0x406   : > { %3059 = vst.msk [vmem:[%s5682_s11 + $0x90] sm:$0xff] %vm3040_vm2, %v2994_v31  ;;  %3062 = vst.msk [vmem:[%s5682_s11 + $0xa8] sm:$0xff] %vm3040_vm2, %v2997_v6  ;;  %2560 = vrot.lane.b32.xlu1 %v5628_v59, %s4341_s7  ;;  %2566 = vrot.lane.b32.xlu0 %v5630_v61, %s4341_s7  ;;  %v6383_v31 = vld [vmem:[#allocation69_spill] sm:$0xff]  ;;  %v6384_v6 = vld [vmem:[#allocation46_spill] sm:$0xff] }
 0x408   : > { %v2505_v41 = vpop.permute.xlu1 %2504  ;;  %v2511_v62 = vpop.permute.xlu0 %2510 }
 0x409   : > { %v2932_v45 = vsel %vm1365_vm1, %v6365_v52, %v2505_v41  ;;  %v2935_v51 = vsel %vm1365_vm1, %v6366_v9, %v2511_v62  ;;  %v6385_v62 = vld [vmem:[#allocation48_spill] sm:$0xff] }
 0x40a   : > { %2816 = vrot.lane.b32.xlu1 %v5626_v25, %s4342_s8  ;;  %2822 = vrot.lane.b32.xlu0 %v6364_v55, %s4342_s8  ;;  %v6367_v25 = vld [vmem:[#allocation60_spill] sm:$0xff] }
 0x40c   : > { %v2761_v35 = vpop.permute.xlu1 %2760  ;;  %v2767_v30 = vpop.permute.xlu0 %2766 }
 0x40d   : > { %v2996_v59 = vsel %vm787_vm0, %v2932_v45, %v2761_v35  ;;  %v2999_v61 = vsel %vm787_vm0, %v2935_v51, %v2767_v30 }
 0x40e   : > { %3061 = vst.msk [vmem:[%s5682_s11 + $0xa0] sm:$0xff] %vm3040_vm2, %v2996_v59  ;;  %3064 = vst.msk [vmem:[%s5682_s11 + $0xb8] sm:$0xff] %vm3040_vm2, %v2999_v61  ;;  %2564 = vrot.lane.b32.xlu1 %v5640_v42, %s4341_s7  ;;  %2570 = vrot.lane.b32.xlu0 %v6367_v25, %s4341_s7  ;;  %v6386_v59 = vld [vmem:[#allocation70_spill] sm:$0xff] }
 0x40f   : > { %v6387_v61 = vld [vmem:[#allocation50_spill] sm:$0xff] }
 0x410   : > { %v2509_v33 = vpop.permute.xlu1 %2508  ;;  %v2515_v7 = vpop.permute.xlu0 %2514 }
 0x411   : > { %v2934_v13 = vsel %vm1365_vm1, %v6370_v60, %v2509_v33  ;;  %v2937_v15 = vsel %vm1365_vm1, %v6371_v5, %v2515_v7  ;;  %v6388_v33 = vld [vmem:[#allocation2_spill] sm:$0xff] }
 0x412   : > { %2820 = vrot.lane.b32.xlu1 %v6368_v53, %s4342_s8  ;;  %2826 = vrot.lane.b32.xlu0 %v6369_v4, %s4342_s8 }
 0x414   : > { %v2765_v37 = vpop.permute.xlu1 %2764  ;;  %v2771_v20 = vpop.permute.xlu0 %2770 }
 0x415   : > { %v2998_v42 = vsel %vm787_vm0, %v2934_v13, %v2765_v37  ;;  %v3001_v63 = vsel %vm787_vm0, %v2937_v15, %v2771_v20  ;;  %v6389_v13 = vld [vmem:[#allocation3_spill] sm:$0xff]  ;;  %v6390_v15 = vld [vmem:[#allocation4_spill] sm:$0xff] }
 0x416   : > { %3063 = vst.msk [vmem:[%s5682_s11 + $0xb0] sm:$0xff] %vm3040_vm2, %v2998_v42  ;;  %3066 = vst.msk [vmem:[%s5682_s11 + $0xc8] sm:$0xff] %vm3040_vm2, %v3001_v63  ;;  %2568 = vrot.lane.b32.xlu1 %v5652_v19, %s4341_s7  ;;  %2574 = vrot.lane.b32.xlu0 %v5654_v22, %s4341_s7  ;;  %v6391_v63 = vld [vmem:[#allocation5_spill] sm:$0xff] }
 0x418   : > { %v2513_v28 = vpop.permute.xlu1 %2512  ;;  %v2519_v29 = vpop.permute.xlu0 %2518 }
 0x419   : > { %v2936_v47 = vsel %vm1365_vm1, %v6374_v44, %v2513_v28  ;;  %v2939_v1 = vsel %vm1365_vm1, %v6375_v26, %v2519_v29  ;;  %v6392_v29 = vld [vmem:[#allocation6_spill] sm:$0xff] }
 0x41a   : > { %2824 = vrot.lane.b32.xlu1 %v6372_v3, %s4342_s8  ;;  %2830 = vrot.lane.b32.xlu0 %v6373_v24, %s4342_s8 }
 0x41c   : > { %v2769_v12 = vpop.permute.xlu1 %2768  ;;  %v2775_v10 = vpop.permute.xlu0 %2774 }
 0x41d   : > { %v3000_v19 = vsel %vm787_vm0, %v2936_v47, %v2769_v12  ;;  %v3003_v22 = vsel %vm787_vm0, %v2939_v1, %v2775_v10  ;;  %v6393_v1 = vld [vmem:[#allocation7_spill] sm:$0xff]  ;;  %v6394_v10 = vld [vmem:[#allocation8_spill] sm:$0xff] }
 0x41e   : > { %3065 = vst.msk [vmem:[%s5682_s11 + $0xc0] sm:$0xff] %vm3040_vm2, %v3000_v19  ;;  %3068 = vst.msk [vmem:[%s5682_s11 + $0xd8] sm:$0xff] %vm3040_vm2, %v3003_v22  ;;  %2572 = vrot.lane.b32.xlu1 %v5664_v11, %s4341_s7  ;;  %2578 = vrot.lane.b32.xlu0 %v5666_v2, %s4341_s7 }
 0x420   : > { %v2517_v34 = vpop.permute.xlu1 %2516  ;;  %v2523_v18 = vpop.permute.xlu0 %2522 }
 0x421   : > { %v2938_v17 = vsel %vm1365_vm1, %v6378_v16, %v2517_v34  ;;  %v2941_v48 = vsel %vm1365_vm1, %v6379_v39, %v2523_v18 }
 0x422   : > { %2828 = vrot.lane.b32.xlu1 %v6376_v27, %s4342_s8  ;;  %2834 = vrot.lane.b32.xlu0 %v6377_v54, %s4342_s8 }
 0x424   : > { %v2773_v8 = vpop.permute.xlu1 %2772  ;;  %v2779_v56 = vpop.permute.xlu0 %2778 }
 0x425   : > { %v3002_v11 = vsel %vm787_vm0, %v2938_v17, %v2773_v8  ;;  %v3005_v2 = vsel %vm787_vm0, %v2941_v48, %v2779_v56  ;;  %v6395_v17 = vld [vmem:[#allocation9_spill] sm:$0xff]  ;;  %v6396_v48 = vld [vmem:[#allocation10_spill] sm:$0xff] }
 0x426   : > { %3067 = vst.msk [vmem:[%s5682_s11 + $0xd0] sm:$0xff] %vm3040_vm2, %v3002_v11  ;;  %3070 = vst.msk [vmem:[%s5682_s11 + $0xe8] sm:$0xff] %vm3040_vm2, %v3005_v2  ;;  %2576 = vrot.lane.b32.xlu1 %v6380_v0, %s4341_s7  ;;  %2582 = vrot.lane.b32.xlu0 %v6381_v14, %s4341_s7 }
 0x428   : > { %v2521_v40 = vpop.permute.xlu1 %2520  ;;  %v2527_v49 = vpop.permute.xlu0 %2526 }
 0x429   : > { %v2940_v41 = vsel %vm1365_vm1, %v6384_v6, %v2521_v40  ;;  %v2943_v55 = vsel %vm1365_vm1, %v6385_v62, %v2527_v49  ;;  %v6397_v49 = vld [vmem:[#allocation11_spill] sm:$0xff] }
 0x42a   : > { %2832 = vrot.lane.b32.xlu1 %v6382_v36, %s4342_s8  ;;  %2838 = vrot.lane.b32.xlu0 %v6383_v31, %s4342_s8  ;;  %v6398_v31 = vld [vmem:[#allocation12_spill] sm:$0xff] }
 0x42c   : > { %v2777_v52 = vpop.permute.xlu1 %2776  ;;  %v2783_v45 = vpop.permute.xlu0 %2782 }
 0x42d   : > { %v3004_v9 = vsel %vm787_vm0, %v2940_v41, %v2777_v52  ;;  %v3007_v51 = vsel %vm787_vm0, %v2943_v55, %v2783_v45 }
 0x42e   : > { %3069 = vst.msk [vmem:[%s5682_s11 + $0xe0] sm:$0xff] %vm3040_vm2, %v3004_v9  ;;  %3072 = vst.msk [vmem:[%s5682_s11 + $0xf8] sm:$0xff] %vm3040_vm2, %v3007_v51  ;;  %2580 = vrot.lane.b32.xlu1 %v5697_v58, %s4341_s7  ;;  %2586 = vrot.lane.b32.xlu0 %v5703_v50, %s4341_s7  ;;  %v6399_v51 = vld [vmem:[#allocation13_spill] sm:$0xff] }
 0x430   : > { %v2525_v35 = vpop.permute.xlu1 %2524  ;;  %v2531_v30 = vpop.permute.xlu0 %2530 }
 0x431   : > { %v2942_v25 = vsel %vm1365_vm1, %v6387_v61, %v2525_v35  ;;  %v2945_v7 = vsel %vm1365_vm1, %v6388_v33, %v2531_v30  ;;  %v6400_v30 = vld [vmem:[#allocation14_spill] sm:$0xff] }
 0x432   : > { %2836 = vrot.lane.b32.xlu1 %v5695_v46, %s4342_s8  ;;  %2842 = vrot.lane.b32.xlu0 %v6386_v59, %s4342_s8 }
 0x434   : > { %v2781_v53 = vpop.permute.xlu1 %2780  ;;  %v2787_v4 = vpop.permute.xlu0 %2786 }
 0x435   : > { %v3006_v58 = vsel %vm787_vm0, %v2942_v25, %v2781_v53  ;;  %v3009_v50 = vsel %vm787_vm0, %v2945_v7, %v2787_v4 }
 0x436   : > { %3071 = vst.msk [vmem:[%s5682_s11 + $0xf0] sm:$0xff] %vm3040_vm2, %v3006_v58  ;;  %3074 = vst.msk [vmem:[%s5682_s11 + $0x108] sm:$0xff] %vm3040_vm2, %v3009_v50  ;;  %2584 = vrot.lane.b32.xlu1 %v5714_v38, %s4341_s7  ;;  %2590 = vrot.lane.b32.xlu0 %v5720_v23, %s4341_s7  ;;  %v6401_v58 = vld [vmem:[#allocation15_spill] sm:$0xff] }
 0x438   : > { %v2529_v46 = vpop.permute.xlu1 %2528  ;;  %v2535_v60 = vpop.permute.xlu0 %2534 }
 0x439   : > { %v2944_v5 = vsel %vm1365_vm1, %v6389_v13, %v2529_v46  ;;  %v2947_v37 = vsel %vm1365_vm1, %v6390_v15, %v2535_v60  ;;  %v6402_v46 = vld [vmem:[#allocation17_spill] sm:$0xff] }
 0x43a   : > { %2840 = vrot.lane.b32.xlu1 %v5712_v32, %s4342_s8  ;;  %2846 = vrot.lane.b32.xlu0 %v5722_v21, %s4342_s8 }
 0x43c   : > { %v2785_v20 = vpop.permute.xlu1 %2784  ;;  %v2791_v38 = vpop.permute.xlu0 %2790 }
 0x43d   : > { %v3008_v23 = vsel %vm787_vm0, %v2944_v5, %v2785_v20  ;;  %v3011_v42 = vsel %vm787_vm0, %v2947_v37, %v2791_v38 }
 0x43e   : > { %3073 = vst.msk [vmem:[%s5682_s11 + $0x100] sm:$0xff] %vm3040_vm2, %v3008_v23  ;;  %3076 = vst.msk [vmem:[%s5682_s11 + $0x118] sm:$0xff] %vm3040_vm2, %v3011_v42  ;;  %2588 = vrot.lane.b32.xlu1 %v5731_v57, %s4341_s7  ;;  %v6403_v23 = vld [vmem:[#allocation19_spill] sm:$0xff] }
 0x440   : > { %v2533_v32 = vpop.permute.xlu1 %2532  ;;  %v2539_v21 = vpop.permute.xlu0 %2538 }
 0x441   : > { %v2946_v28 = vsel %vm1365_vm1, %v6391_v63, %v2533_v32  ;;  %v2949_v3 = vsel %vm1365_vm1, %v6392_v29, %v2539_v21  ;;  %v6404_v32 = vld [vmem:[#allocation21_spill] sm:$0xff] }
 0x442   : > { %2844 = vrot.lane.b32.xlu1 %v5729_v43, %s4342_s8 }
 0x444   : > { %v2789_v24 = vpop.permute.xlu1 %2788  ;;  %v2795_v44 = vpop.permute.xlu0 %2794 }
 0x445   : > { %v3010_v47 = vsel %vm787_vm0, %v2946_v28, %v2789_v24  ;;  %v3013_v26 = vsel %vm787_vm0, %v2949_v3, %v2795_v44 }
 0x446   : > { %3075 = vst.msk [vmem:[%s5682_s11 + $0x110] sm:$0xff] %vm3040_vm2, %v3010_v47  ;;  %3078 = vst.msk [vmem:[%s5682_s11 + $0x128] sm:$0xff] %vm3040_vm2, %v3013_v26  ;;  %v6405_v47 = vld [vmem:[#allocation23_spill] sm:$0xff] }
 0x448   : > { %v2537_v57 = vpop.permute.xlu1 %2536  ;;  %v2543_v43 = vpop.permute.xlu0 %2542 }
 0x449   : > { %v2948_v12 = vsel %vm1365_vm1, %v6393_v1, %v2537_v57  ;;  %v2951_v19 = vsel %vm1365_vm1, %v6394_v10, %v2543_v43  ;;  %v6406_v57 = vld [vmem:[#allocation25_spill] sm:$0xff] }
 0x44c   : > { %v2793_v22 = vpop.permute.xlu1 %2792  ;;  %v2799_v34 = vpop.permute.xlu0 %2798 }
 0x44d   : > { %v3012_v18 = vsel %vm787_vm0, %v2948_v12, %v2793_v22  ;;  %v3015_v27 = vsel %vm787_vm0, %v2951_v19, %v2799_v34 }
 0x44e   : > { %3077 = vst.msk [vmem:[%s5682_s11 + $0x120] sm:$0xff] %vm3040_vm2, %v3012_v18  ;;  %3080 = vst.msk [vmem:[%s5682_s11 + $0x138] sm:$0xff] %vm3040_vm2, %v3015_v27  ;;  %v6407_v18 = vld [vmem:[#allocation27_spill] sm:$0xff] }
 0x450   : > { %v2541_v54 = vpop.permute.xlu1 %2540  ;;  %v2547_v16 = vpop.permute.xlu0 %2546 }
 0x451   : > { %v2950_v39 = vsel %vm1365_vm1, %v6395_v17, %v2541_v54  ;;  %v2953_v8 = vsel %vm1365_vm1, %v6396_v48, %v2547_v16  ;;  %v6408_v54 = vld [vmem:[#allocation29_spill] sm:$0xff] }
 0x454   : > { %v2797_v56 = vpop.permute.xlu1 %2796  ;;  %v2803_v11 = vpop.permute.xlu0 %2802 }
 0x455   : > { %v3014_v2 = vsel %vm787_vm0, %v2950_v39, %v2797_v56  ;;  %v3017_v0 = vsel %vm787_vm0, %v2953_v8, %v2803_v11 }
 0x456   : > { %3079 = vst.msk [vmem:[%s5682_s11 + $0x130] sm:$0xff] %vm3040_vm2, %v3014_v2  ;;  %3082 = vst.msk [vmem:[%s5682_s11 + $0x148] sm:$0xff] %vm3040_vm2, %v3017_v0  ;;  %v6409_v2 = vld [vmem:[#allocation31_spill] sm:$0xff] }
 0x458   : > { %v2545_v14 = vpop.permute.xlu1 %2544  ;;  %v2551_v40 = vpop.permute.xlu0 %2550 }
 0x459   : > { %v2952_v36 = vsel %vm1365_vm1, %v6397_v49, %v2545_v14  ;;  %v2955_v6 = vsel %vm1365_vm1, %v6398_v31, %v2551_v40  ;;  %v6410_v14 = vld [vmem:[#allocation33_spill] sm:$0xff] }
 0x45c   : > { %v2801_v41 = vpop.permute.xlu1 %2800  ;;  %v2807_v62 = vpop.permute.xlu0 %2806 }
 0x45d   : > { %v3016_v55 = vsel %vm787_vm0, %v2952_v36, %v2801_v41  ;;  %v3019_v52 = vsel %vm787_vm0, %v2955_v6, %v2807_v62 }
 0x45e   : > { %3081 = vst.msk [vmem:[%s5682_s11 + $0x140] sm:$0xff] %vm3040_vm2, %v3016_v55  ;;  %3084 = vst.msk [vmem:[%s5682_s11 + $0x158] sm:$0xff] %vm3040_vm2, %v3019_v52  ;;  %v6411_v55 = vld [vmem:[#allocation35_spill] sm:$0xff] }
 0x460   : > { %v2549_v45 = vpop.permute.xlu1 %2548  ;;  %v2555_v9 = vpop.permute.xlu0 %2554 }
 0x461   : > { %v2954_v35 = vsel %vm1365_vm1, %v6399_v51, %v2549_v45  ;;  %v2957_v59 = vsel %vm1365_vm1, %v6400_v30, %v2555_v9  ;;  %v6412_v45 = vld [vmem:[#allocation37_spill] sm:$0xff] }
 0x464   : > { %v2805_v61 = vpop.permute.xlu1 %2804  ;;  %v2811_v25 = vpop.permute.xlu0 %2810 }
 0x465   : > { %v3018_v33 = vsel %vm787_vm0, %v2954_v35, %v2805_v61  ;;  %v3021_v7 = vsel %vm787_vm0, %v2957_v59, %v2811_v25 }
 0x466   : > { %3083 = vst.msk [vmem:[%s5682_s11 + $0x150] sm:$0xff] %vm3040_vm2, %v3018_v33  ;;  %3086 = vst.msk [vmem:[%s5682_s11 + $0x168] sm:$0xff] %vm3040_vm2, %v3021_v7  ;;  %v6413_v33 = vld [vmem:[#allocation39_spill] sm:$0xff] }
 0x468   : > { %v2553_v53 = vpop.permute.xlu1 %2552  ;;  %v2559_v4 = vpop.permute.xlu0 %2558 }
 0x469   : > { %v2956_v50 = vsel %vm1365_vm1, %v6401_v58, %v2553_v53  ;;  %v2959_v60 = vsel %vm1365_vm1, %v6402_v46, %v2559_v4  ;;  %v6414_v53 = vld [vmem:[#allocation41_spill] sm:$0xff] }
 0x46c   : > { %v2809_v13 = vpop.permute.xlu1 %2808  ;;  %v2815_v5 = vpop.permute.xlu0 %2814 }
 0x46d   : > { %v3020_v15 = vsel %vm787_vm0, %v2956_v50, %v2809_v13  ;;  %v3023_v37 = vsel %vm787_vm0, %v2959_v60, %v2815_v5 }
 0x46e   : > { %3085 = vst.msk [vmem:[%s5682_s11 + $0x160] sm:$0xff] %vm3040_vm2, %v3020_v15  ;;  %3088 = vst.msk [vmem:[%s5682_s11 + $0x178] sm:$0xff] %vm3040_vm2, %v3023_v37  ;;  %v6415_v15 = vld [vmem:[#allocation43_spill] sm:$0xff] }
 0x470   : > { %v2557_v20 = vpop.permute.xlu1 %2556  ;;  %v2563_v38 = vpop.permute.xlu0 %2562 }
 0x471   : > { %v2958_v42 = vsel %vm1365_vm1, %v6403_v23, %v2557_v20  ;;  %v2961_v21 = vsel %vm1365_vm1, %v6404_v32, %v2563_v38  ;;  %v6416_v20 = vld [vmem:[#allocation45_spill] sm:$0xff] }
 0x474   : > { %v2813_v63 = vpop.permute.xlu1 %2812  ;;  %v2819_v28 = vpop.permute.xlu0 %2818 }
 0x475   : > { %v3022_v29 = vsel %vm787_vm0, %v2958_v42, %v2813_v63  ;;  %v3025_v3 = vsel %vm787_vm0, %v2961_v21, %v2819_v28 }
 0x476   : > { %3087 = vst.msk [vmem:[%s5682_s11 + $0x170] sm:$0xff] %vm3040_vm2, %v3022_v29  ;;  %3090 = vst.msk [vmem:[%s5682_s11 + $0x188] sm:$0xff] %vm3040_vm2, %v3025_v3  ;;  %v6417_v29 = vld [vmem:[#allocation47_spill] sm:$0xff] }
 0x478   : > { %v2561_v24 = vpop.permute.xlu1 %2560  ;;  %v2567_v44 = vpop.permute.xlu0 %2566 }
 0x479   : > { %v2960_v26 = vsel %vm1365_vm1, %v6405_v47, %v2561_v24  ;;  %v2963_v43 = vsel %vm1365_vm1, %v6406_v57, %v2567_v44  ;;  %v6418_v24 = vld [vmem:[#allocation49_spill] sm:$0xff] }
 0x47c   : > { %v2817_v1 = vpop.permute.xlu1 %2816  ;;  %v2823_v12 = vpop.permute.xlu0 %2822 }
 0x47d   : > { %v3024_v10 = vsel %vm787_vm0, %v2960_v26, %v2817_v1  ;;  %v3027_v19 = vsel %vm787_vm0, %v2963_v43, %v2823_v12  ;;  %v6419_v12 = vld [vmem:[#allocation51_spill] sm:$0xff] }
 0x47e   : > { %3089 = vst.msk [vmem:[%s5682_s11 + $0x180] sm:$0xff] %vm3040_vm2, %v3024_v10  ;;  %3092 = vst.msk [vmem:[%s5682_s11 + $0x198] sm:$0xff] %vm3040_vm2, %v3027_v19 }
 0x480   : > { %v2565_v22 = vpop.permute.xlu1 %2564  ;;  %v2571_v34 = vpop.permute.xlu0 %2570 }
 0x481   : > { %v2962_v27 = vsel %vm1365_vm1, %v6407_v18, %v2565_v22  ;;  %v2965_v16 = vsel %vm1365_vm1, %v6408_v54, %v2571_v34 }
 0x484   : > { %v2821_v17 = vpop.permute.xlu1 %2820  ;;  %v2827_v39 = vpop.permute.xlu0 %2826 }
 0x485   : > { %v3026_v48 = vsel %vm787_vm0, %v2962_v27, %v2821_v17  ;;  %v3029_v8 = vsel %vm787_vm0, %v2965_v16, %v2827_v39 }
 0x486   : > { %3091 = vst.msk [vmem:[%s5682_s11 + $0x190] sm:$0xff] %vm3040_vm2, %v3026_v48  ;;  %3094 = vst.msk [vmem:[%s5682_s11 + $0x1a8] sm:$0xff] %vm3040_vm2, %v3029_v8 }
 0x488   : > { %v2569_v56 = vpop.permute.xlu1 %2568  ;;  %v2575_v11 = vpop.permute.xlu0 %2574 }
 0x489   : > { %v2964_v0 = vsel %vm1365_vm1, %v6409_v2, %v2569_v56  ;;  %v2967_v40 = vsel %vm1365_vm1, %v6410_v14, %v2575_v11 }
 0x48c   : > { %v2825_v49 = vpop.permute.xlu1 %2824  ;;  %v2831_v36 = vpop.permute.xlu0 %2830 }
 0x48d   : > { %v3028_v31 = vsel %vm787_vm0, %v2964_v0, %v2825_v49  ;;  %v3031_v6 = vsel %vm787_vm0, %v2967_v40, %v2831_v36 }
 0x48e   : > { %3093 = vst.msk [vmem:[%s5682_s11 + $0x1a0] sm:$0xff] %vm3040_vm2, %v3028_v31  ;;  %3096 = vst.msk [vmem:[%s5682_s11 + $0x1b8] sm:$0xff] %vm3040_vm2, %v3031_v6 }
 0x490   : > { %v2573_v41 = vpop.permute.xlu1 %2572  ;;  %v2579_v62 = vpop.permute.xlu0 %2578 }
 0x491   : > { %v2966_v52 = vsel %vm1365_vm1, %v6411_v55, %v2573_v41  ;;  %v2969_v9 = vsel %vm1365_vm1, %v6412_v45, %v2579_v62 }
 0x494   : > { %v2829_v51 = vpop.permute.xlu1 %2828  ;;  %v2835_v35 = vpop.permute.xlu0 %2834 }
 0x495   : > { %v3030_v30 = vsel %vm787_vm0, %v2966_v52, %v2829_v51  ;;  %v3033_v59 = vsel %vm787_vm0, %v2969_v9, %v2835_v35 }
 0x496   : > { %3095 = vst.msk [vmem:[%s5682_s11 + $0x1b0] sm:$0xff] %vm3040_vm2, %v3030_v30  ;;  %3098 = vst.msk [vmem:[%s5682_s11 + $0x1c8] sm:$0xff] %vm3040_vm2, %v3033_v59 }
 0x498   : > { %v2577_v61 = vpop.permute.xlu1 %2576  ;;  %v2583_v25 = vpop.permute.xlu0 %2582 }
 0x499   : > { %v2968_v7 = vsel %vm1365_vm1, %v6413_v33, %v2577_v61  ;;  %v2971_v4 = vsel %vm1365_vm1, %v6414_v53, %v2583_v25 }
 0x49c   : > { %v2833_v58 = vpop.permute.xlu1 %2832  ;;  %v2839_v50 = vpop.permute.xlu0 %2838 }
 0x49d   : > { %v3032_v46 = vsel %vm787_vm0, %v2968_v7, %v2833_v58  ;;  %v3035_v60 = vsel %vm787_vm0, %v2971_v4, %v2839_v50 }
 0x49e   : > { %3097 = vst.msk [vmem:[%s5682_s11 + $0x1c0] sm:$0xff] %vm3040_vm2, %v3032_v46  ;;  %3100 = vst.msk [vmem:[%s5682_s11 + $0x1d8] sm:$0xff] %vm3040_vm2, %v3035_v60 }
 0x4a0   : > { %v2581_v13 = vpop.permute.xlu1 %2580  ;;  %v2587_v5 = vpop.permute.xlu0 %2586 }
 0x4a1   : > { %v2970_v37 = vsel %vm1365_vm1, %v6415_v15, %v2581_v13  ;;  %v2973_v38 = vsel %vm1365_vm1, %v6416_v20, %v2587_v5 }
 0x4a4   : > { %v2837_v23 = vpop.permute.xlu1 %2836  ;;  %v2843_v42 = vpop.permute.xlu0 %2842 }
 0x4a5   : > { %v3034_v32 = vsel %vm787_vm0, %v2970_v37, %v2837_v23  ;;  %v3037_v21 = vsel %vm787_vm0, %v2973_v38, %v2843_v42 }
 0x4a6   : > { %3099 = vst.msk [vmem:[%s5682_s11 + $0x1d0] sm:$0xff] %vm3040_vm2, %v3034_v32  ;;  %3102 = vst.msk [vmem:[%s5682_s11 + $0x1e8] sm:$0xff] %vm3040_vm2, %v3037_v21 }
 0x4a8   : > { %v2585_v63 = vpop.permute.xlu1 %2584  ;;  %v2591_v28 = vpop.permute.xlu0 %2590 }
 0x4a9   : > { %v2972_v3 = vsel %vm1365_vm1, %v6417_v29, %v2585_v63  ;;  %v2975_v44 = vsel %vm1365_vm1, %v6418_v24, %v2591_v28 }
 0x4ac   : > { %v2841_v47 = vpop.permute.xlu1 %2840  ;;  %v2847_v26 = vpop.permute.xlu0 %2846 }
 0x4ad   : > { %v3036_v57 = vsel %vm787_vm0, %v2972_v3, %v2841_v47  ;;  %v3039_v43 = vsel %vm787_vm0, %v2975_v44, %v2847_v26 }
 0x4ae   : > { %3101 = vst.msk [vmem:[%s5682_s11 + $0x1e0] sm:$0xff] %vm3040_vm2, %v3036_v57  ;;  %3104 = vst.msk [vmem:[%s5682_s11 + $0x1f8] sm:$0xff] %vm3040_vm2, %v3039_v43 }
 0x4b0   : > { %v2589_v1 = vpop.permute.xlu1 %2588 }
 0x4b1   : > { %v2974_v10 = vsel %vm1365_vm1, %v6419_v12, %v2589_v1 }
 0x4b4   : > { %v2845_v19 = vpop.permute.xlu1 %2844 }
 0x4b5   : > { %v3038_v22 = vsel %vm787_vm0, %v2974_v10, %v2845_v19 }
 0x4b6   : > { %3103 = vst.msk [vmem:[%s5682_s11 + $0x1f0] sm:$0xff] %vm3040_vm2, %v3038_v22 }
 0x4b7 PF: > { %s17_s21 = sadd.s32 1, %s4339_s21  }
 0x4b8   : > { %p14_p4 = scmp.ge.s32.totalorder %s17_s21, 4  }
 0x4ba   :  { %16 = sbr.rel (!%p14_p4) target bundleno = 1 (0x1), region = 88 }

</bundles_post_ra>
